<compile_context>
chip_gen: v7x
topology: tpu7x:2x2x1
jax: 0.10.0
libtpu: 0.0.40
codegen_flags: <defaults>
</compile_context>

<pallas_src>
import functools

import jax
import jax.numpy as jnp
from jax.experimental import pallas as pl
from jax.experimental.pallas import tpu as pltpu

NUM_CLASSES = 8
NUM_SAMPLES = 16          # module default (> num_classes -> sample w/ replacement)
DOWNSAMPLE = 32           # module default
B, H, W = 2, 128, 128     # small synthetic shapes


# ---------------------------------------------------------------------------
# Kernel: binary-mask creation + AvgPool2d + argmax + one-hot  (pool_masks)
# ---------------------------------------------------------------------------
def _mask_pool_kernel(labels_ref, row_pool_ref, col_pool_ref, rep_ref,
                      cls_ids_ref, out_ref, *, num_classes):
    # labels_ref:   (bb*H, W)        int8 class ids (bb = batch rows per step)
    # row_pool_ref: (bb*HP, bb*H)    bf16 0/1 row pooler (H -> HP, per batch)
    # col_pool_ref: (C*W, C*WP)      bf16 0/1 block-diag column pooler
    # rep_ref:      (WP, C*WP)       bf16 0/1 lane replicator
    # cls_ids_ref:  (1, C*WP)        f32 class id per lane block
    # out_ref:      (bb, HP, C*WP)   f32 one-hot over classes, lane k*WP + wp
    bb, ph, cpw = out_ref.shape
    pw = cpw // num_classes
    bf16, f32 = jnp.bfloat16, jnp.float32

    labels = labels_ref[...].astype(jnp.int32)                      # (bb*H, W)

    # Lane-stacked binary class masks: (bb*H, C*W), lane index k*W + w.
    m = jnp.concatenate(
        [(labels == k).astype(bf16) for k in range(num_classes)], axis=1)

    # Pool rows first (H -> HP), then the wide lane contraction (W -> WP per
    # class).  Partial counts <= ds are exact in bf16 (asserted in wrapper);
    # the AvgPool 1/(ds*ds) scaling is dropped (argmax-invariant).
    r0 = jnp.dot(row_pool_ref[...], m,
                 preferred_element_type=f32)                        # (bb*HP, C*W)
    counts = jnp.dot(r0.astype(bf16), col_pool_ref[...],
                     preferred_element_type=f32)                    # (bb*HP, C*WP)

    # First-max argmax over class blocks (torch.argmax semantics) on the
    # single packed tile; best_idx kept in f32 (small ints, exact).
    best_val = counts[:, 0:pw]
    best_idx = jnp.zeros(best_val.shape, f32)
    for k in range(1, num_classes):
        cur = counts[:, k * pw:(k + 1) * pw]
        better = cur > best_val
        best_val = jnp.where(better, cur, best_val)
        best_idx = jnp.where(better, jnp.float32(k), best_idx)

    # Replicate best_idx across the class blocks with a tiny matmul (avoids
    # unaligned lane concatenation), then one compare builds the one-hot.
    best_rep = jnp.dot(best_idx.astype(bf16), rep_ref[...],
                       preferred_element_type=f32)                  # (bb*HP, C*WP)
    onehot = (cls_ids_ref[...] == best_rep).astype(f32)             # (bb*HP, C*WP)

    # Static per-batch stores (bb is 1 or B; avoids an in-kernel reshape).
    for b in range(bb):
        out_ref[b] = onehot[b * ph:(b + 1) * ph, :]


def _tensorcores_per_chip() -> int:
    try:
        kind = jax.devices()[0].device_kind.lower()
    except Exception:
        return 1
    return 2 if "v7" in kind else 1     # v5e/v6e: 1 TC per chip; v7x: 2 TCs


def pool_masks(labels, num_classes, ds, fold_batch=None):
    """labels: (B, H, W) int -> (B, num_classes, D) f32 one-hot, D = HP*WP."""
    b, h, w = labels.shape
    assert h % ds == 0 and w % ds == 0
    assert ds <= 256, "bf16 partial counts are only exact for ds <= 256"
    assert num_classes <= 127, "labels are carried as int8"
    ph, pw = h // ds, w // ds
    cpw = num_classes * pw

    if fold_batch is None:
        # Fold the batch into one grid step on single-TensorCore chips
        # (v5e/v6e); keep grid=(B,) on v7x so its two TensorCores split B.
        fold_batch = _tensorcores_per_chip() < 2 or b == 1
    bb = b if fold_batch else 1

    bf16 = jnp.bfloat16
    # Constant helper matrices, built once in XLA and kept resident in VMEM
    # across grid steps (their block index never changes).
    row_pool = (jnp.arange(bb * h)[None, :] // ds ==
                jnp.arange(bb * ph)[:, None]).astype(bf16)          # (bb*HP, bb*H)
    col_pool = (jnp.arange(num_classes * w)[:, None] // ds ==
                jnp.arange(cpw)[None, :]).astype(bf16)              # (C*W, C*WP)
    rep = (jnp.arange(cpw)[None, :] % pw ==
           jnp.arange(pw)[:, None]).astype(bf16)                    # (WP, C*WP)
    cls_ids = (jnp.arange(cpw)[None, :] // pw).astype(jnp.float32)  # (1, C*WP)

    labels2d = labels.astype(jnp.int8).reshape(b * h, w)

    kernel = functools.partial(_mask_pool_kernel, num_classes=num_classes)
    const2d = lambda i: (0, 0)
    out = pl.pallas_call(
        kernel,
        out_shape=jax.ShapeDtypeStruct((b, ph, cpw), jnp.float32),
        grid=(b // bb,),
        in_specs=[
            pl.BlockSpec((bb * h, w), lambda i: (i, 0)),
            pl.BlockSpec((bb * ph, bb * h), const2d),
            pl.BlockSpec((num_classes * w, cpw), const2d),
            pl.BlockSpec((pw, cpw), const2d),
            pl.BlockSpec((1, cpw), const2d),
        ],
        out_specs=pl.BlockSpec((bb, ph, cpw), lambda i: (i, 0, 0)),
        compiler_params=pltpu.CompilerParams(dimension_semantics=("parallel",)),
        # VMEM use at these shapes is < 1 MiB; no vmem_limit_bytes needed.
        # TODO(synk): for H/W >= ~1k, tile along H on a grid axis and budget
        # the bf16 (H, C*W) mask stack against v7x's 32 MiB scoped VMEM.
    )(labels2d, row_pool, col_pool, rep, cls_ids)

    # Kernel layout is out[b, hp, k*WP + wp]; reorder to (b, c, hp*WP + wp),
    # i.e. rearrange 'b c h w -> b c (h w)'.  A few hundred floats: free in XLA.
    out = out.reshape(b, ph, num_classes, pw).transpose(0, 2, 1, 3)
    return out.reshape(b, num_classes, ph * pw)


# ---------------------------------------------------------------------------
# Sampling + normalization (plain XLA on ~2 KB of data; no Pallas launch)
# ---------------------------------------------------------------------------
def sample_masks(binary_masks, key, num_samples):
    b, c, d = binary_masks.shape
    mask_exists = binary_masks.sum(axis=-1) > 0.001
    sel = mask_exists.astype(jnp.float32) + 1e-11
    probs = sel / jnp.sum(sel, axis=-1, keepdims=True)
    replace = num_samples > c                    # static, same branch as the module
    keys = jax.random.split(key, b)
    # TODO(synk): torch.multinomial's RNG stream cannot be reproduced bit-exactly.
    choose = lambda k, p: jax.random.choice(k, c, shape=(num_samples,),
                                            replace=replace, p=p)
    mask_ids = jax.vmap(choose)(keys, probs)                       # (B, S)
    sampled = jnp.take_along_axis(binary_masks, mask_ids[:, :, None], axis=1)
    return sampled, mask_ids


def mask_pooling_forward(masks, key, num_classes=NUM_CLASSES,
                         num_samples=NUM_SAMPLES, downsample=DOWNSAMPLE):
    if masks.ndim == 4:                          # (B, 1, H, W) -> (B, H, W)
        masks = masks[:, 0]
    binary_masks = pool_masks(masks.astype(jnp.int32), num_classes, downsample)
    sampled, sampled_ids = sample_masks(binary_masks, key, num_samples)
    area = jnp.sum(sampled, axis=-1, keepdims=True)
    sampled = sampled / jnp.maximum(area, 1.0)   # torch.maximum(area, tensor(1.0))
    return sampled, sampled_ids


# ---------------------------------------------------------------------------
# Pure-JAX reference for the pooled one-hot masks (exact check)
# ---------------------------------------------------------------------------
def _pool_masks_ref(labels, num_classes, ds):
    b, h, w = labels.shape
    ph, pw = h // ds, w // ds
    oh = (labels[:, None] ==
          jnp.arange(num_classes)[None, :, None, None]).astype(jnp.float32)
    pooled = oh.reshape(b, num_classes, ph, ds, pw, ds).sum(axis=(3, 5))
    idx = jnp.argmax(pooled.reshape(b, num_classes, ph * pw), axis=1)   # (b, d)
    eye = jnp.eye(num_classes, dtype=jnp.float32)
    return jnp.transpose(eye[idx], (0, 2, 1))                            # (b, c, d)


if __name__ == "__main__":
    key = jax.random.PRNGKey(0)
    k_data, k_sample = jax.random.split(key)
    # synthetic class-id label map, NCHW like the PyTorch module expects
    masks = jax.random.randint(k_data, (B, 1, H, W), 0, NUM_CLASSES, dtype=jnp.int32)

    sampled_masks, sampled_mask_ids = mask_pooling_forward(masks, k_sample)
    jax.block_until_ready((sampled_masks, sampled_mask_ids))

    D = (H // DOWNSAMPLE) * (W // DOWNSAMPLE)
    assert sampled_masks.shape == (B, NUM_SAMPLES, D)
    assert sampled_mask_ids.shape == (B, NUM_SAMPLES)

    # kernel vs. pure-JAX reference, for BOTH grid strategies (exact: all
    # intermediate values are small integers)
    ref = _pool_masks_ref(masks[:, 0], NUM_CLASSES, DOWNSAMPLE)
    for fold in (True, False):
        got = pool_masks(masks[:, 0], NUM_CLASSES, DOWNSAMPLE, fold_batch=fold)
        assert bool(jnp.array_equal(got, ref)), (
            f"pool_masks mismatch vs reference (fold_batch={fold})")

    # each sampled mask row is all-zero or sums to 1 after area normalization
    row_sums = jnp.sum(sampled_masks, axis=-1)
    assert bool(jnp.all((row_sums < 1e-6) | (jnp.abs(row_sums - 1.0) < 1e-5)))
    print("KERNEL_OK")
</pallas_src>

<mosaic_0001>
module attributes {stable_mosaic.version = 11 : i64} {
  func.func @_mask_pool_kernel(%arg0: i32, %arg1: memref<256x128xi8, #tpu.memory_space<vmem>>, %arg2: memref<8x256xbf16, #tpu.memory_space<vmem>>, %arg3: memref<1024x32xbf16, #tpu.memory_space<vmem>>, %arg4: memref<4x32xbf16, #tpu.memory_space<vmem>>, %arg5: memref<1x32xf32, #tpu.memory_space<vmem>>, %arg6: memref<2x4x32xf32, #tpu.memory_space<vmem>>) attributes {dimension_semantics = [#tpu.dimension_semantics<parallel>], iteration_bounds = array<i64: 1>, scalar_prefetch = 0 : i64, scratch_operands = 0 : i64, tpu.core_type = #tpu.core_type<tc>, window_params = [{transform_indices = @transform_0, window_bounds = array<i64: 256, 128>}, {pipeline_mode = #tpu.pipeline_mode<synchronous>, transform_indices = @transform_1, window_bounds = array<i64: 8, 256>}, {pipeline_mode = #tpu.pipeline_mode<synchronous>, transform_indices = @transform_2, window_bounds = array<i64: 1024, 32>}, {pipeline_mode = #tpu.pipeline_mode<synchronous>, transform_indices = @transform_3, window_bounds = array<i64: 4, 32>}, {pipeline_mode = #tpu.pipeline_mode<synchronous>, transform_indices = @transform_4, window_bounds = array<i64: 1, 32>}, {transform_indices = @transform_5, window_bounds = array<i64: 2, 4, 32>}]} {
    %c0 = arith.constant 0 : index
    %c0_0 = arith.constant 0 : index
    %0 = vector.load %arg1[%c0, %c0_0] : memref<256x128xi8, #tpu.memory_space<vmem>>, vector<256x128xi8>
    %1 = arith.extsi %0 : vector<256x128xi8> to vector<256x128xi32>
    %c0_i32 = arith.constant 0 : i32
    %2 = vector.broadcast %c0_i32 : i32 to vector<256x128xi32>
    %3 = arith.cmpi eq, %1, %2 : vector<256x128xi32>
    %4 = arith.extui %3 : vector<256x128xi1> to vector<256x128xi32>
    %5 = arith.sitofp %4 : vector<256x128xi32> to vector<256x128xf32>
    %6 = arith.truncf %5 : vector<256x128xf32> to vector<256x128xbf16>
    %c1_i32 = arith.constant 1 : i32
    %7 = vector.broadcast %c1_i32 : i32 to vector<256x128xi32>
    %8 = arith.cmpi eq, %1, %7 : vector<256x128xi32>
    %9 = arith.extui %8 : vector<256x128xi1> to vector<256x128xi32>
    %10 = arith.sitofp %9 : vector<256x128xi32> to vector<256x128xf32>
    %11 = arith.truncf %10 : vector<256x128xf32> to vector<256x128xbf16>
    %c2_i32 = arith.constant 2 : i32
    %12 = vector.broadcast %c2_i32 : i32 to vector<256x128xi32>
    %13 = arith.cmpi eq, %1, %12 : vector<256x128xi32>
    %14 = arith.extui %13 : vector<256x128xi1> to vector<256x128xi32>
    %15 = arith.sitofp %14 : vector<256x128xi32> to vector<256x128xf32>
    %16 = arith.truncf %15 : vector<256x128xf32> to vector<256x128xbf16>
    %c3_i32 = arith.constant 3 : i32
    %17 = vector.broadcast %c3_i32 : i32 to vector<256x128xi32>
    %18 = arith.cmpi eq, %1, %17 : vector<256x128xi32>
    %19 = arith.extui %18 : vector<256x128xi1> to vector<256x128xi32>
    %20 = arith.sitofp %19 : vector<256x128xi32> to vector<256x128xf32>
    %21 = arith.truncf %20 : vector<256x128xf32> to vector<256x128xbf16>
    %c4_i32 = arith.constant 4 : i32
    %22 = vector.broadcast %c4_i32 : i32 to vector<256x128xi32>
    %23 = arith.cmpi eq, %1, %22 : vector<256x128xi32>
    %24 = arith.extui %23 : vector<256x128xi1> to vector<256x128xi32>
    %25 = arith.sitofp %24 : vector<256x128xi32> to vector<256x128xf32>
    %26 = arith.truncf %25 : vector<256x128xf32> to vector<256x128xbf16>
    %c5_i32 = arith.constant 5 : i32
    %27 = vector.broadcast %c5_i32 : i32 to vector<256x128xi32>
    %28 = arith.cmpi eq, %1, %27 : vector<256x128xi32>
    %29 = arith.extui %28 : vector<256x128xi1> to vector<256x128xi32>
    %30 = arith.sitofp %29 : vector<256x128xi32> to vector<256x128xf32>
    %31 = arith.truncf %30 : vector<256x128xf32> to vector<256x128xbf16>
    %c6_i32 = arith.constant 6 : i32
    %32 = vector.broadcast %c6_i32 : i32 to vector<256x128xi32>
    %33 = arith.cmpi eq, %1, %32 : vector<256x128xi32>
    %34 = arith.extui %33 : vector<256x128xi1> to vector<256x128xi32>
    %35 = arith.sitofp %34 : vector<256x128xi32> to vector<256x128xf32>
    %36 = arith.truncf %35 : vector<256x128xf32> to vector<256x128xbf16>
    %c7_i32 = arith.constant 7 : i32
    %37 = vector.broadcast %c7_i32 : i32 to vector<256x128xi32>
    %38 = arith.cmpi eq, %1, %37 : vector<256x128xi32>
    %39 = arith.extui %38 : vector<256x128xi1> to vector<256x128xi32>
    %40 = arith.sitofp %39 : vector<256x128xi32> to vector<256x128xf32>
    %41 = arith.truncf %40 : vector<256x128xf32> to vector<256x128xbf16>
    %42 = tpu.concatenate %6, %11, %16, %21, %26, %31, %36, %41 in 1 : vector<256x128xbf16>, vector<256x128xbf16>, vector<256x128xbf16>, vector<256x128xbf16>, vector<256x128xbf16>, vector<256x128xbf16>, vector<256x128xbf16>, vector<256x128xbf16> -> vector<256x1024xbf16>
    %c0_1 = arith.constant 0 : index
    %c0_2 = arith.constant 0 : index
    %43 = vector.load %arg2[%c0_1, %c0_2] : memref<8x256xbf16, #tpu.memory_space<vmem>>, vector<8x256xbf16>
    %cst = arith.constant dense<0.000000e+00> : vector<8x1024xf32>
    %44 = tpu.matmul %43, %42, %cst {dimension_numbers = #tpu.dot_dimension_numbers<[1], [0], [0], [1], [0, 0, 1, 1], [], []>} : vector<8x256xbf16>, vector<256x1024xbf16>, vector<8x1024xf32> -> vector<8x1024xf32>
    %45 = arith.truncf %44 : vector<8x1024xf32> to vector<8x1024xbf16>
    %c0_3 = arith.constant 0 : index
    %c0_4 = arith.constant 0 : index
    %46 = vector.load %arg3[%c0_3, %c0_4] : memref<1024x32xbf16, #tpu.memory_space<vmem>>, vector<1024x32xbf16>
    %cst_5 = arith.constant dense<0.000000e+00> : vector<8x32xf32>
    %47 = tpu.matmul %45, %46, %cst_5 {dimension_numbers = #tpu.dot_dimension_numbers<[1], [0], [0], [1], [0, 0, 1, 1], [], []>} : vector<8x1024xbf16>, vector<1024x32xbf16>, vector<8x32xf32> -> vector<8x32xf32>
    %48 = vector.extract_strided_slice %47 {offsets = [0, 0], sizes = [8, 4], strides = [1, 1]} : vector<8x32xf32> to vector<8x4xf32>
    %cst_6 = arith.constant 0.000000e+00 : f32
    %49 = vector.broadcast %cst_6 : f32 to vector<8x4xf32>
    %50 = vector.extract_strided_slice %47 {offsets = [0, 4], sizes = [8, 4], strides = [1, 1]} : vector<8x32xf32> to vector<8x4xf32>
    %51 = arith.cmpf ogt, %50, %48 : vector<8x4xf32>
    %52 = arith.select %51, %50, %48 : vector<8x4xi1>, vector<8x4xf32>
    %cst_7 = arith.constant 1.000000e+00 : f32
    %53 = vector.broadcast %cst_7 : f32 to vector<8x4xf32>
    %54 = arith.select %51, %53, %49 : vector<8x4xi1>, vector<8x4xf32>
    %55 = vector.extract_strided_slice %47 {offsets = [0, 8], sizes = [8, 4], strides = [1, 1]} : vector<8x32xf32> to vector<8x4xf32>
    %56 = arith.cmpf ogt, %55, %52 : vector<8x4xf32>
    %57 = arith.select %56, %55, %52 : vector<8x4xi1>, vector<8x4xf32>
    %cst_8 = arith.constant 2.000000e+00 : f32
    %58 = vector.broadcast %cst_8 : f32 to vector<8x4xf32>
    %59 = arith.select %56, %58, %54 : vector<8x4xi1>, vector<8x4xf32>
    %60 = vector.extract_strided_slice %47 {offsets = [0, 12], sizes = [8, 4], strides = [1, 1]} : vector<8x32xf32> to vector<8x4xf32>
    %61 = arith.cmpf ogt, %60, %57 : vector<8x4xf32>
    %62 = arith.select %61, %60, %57 : vector<8x4xi1>, vector<8x4xf32>
    %cst_9 = arith.constant 3.000000e+00 : f32
    %63 = vector.broadcast %cst_9 : f32 to vector<8x4xf32>
    %64 = arith.select %61, %63, %59 : vector<8x4xi1>, vector<8x4xf32>
    %65 = vector.extract_strided_slice %47 {offsets = [0, 16], sizes = [8, 4], strides = [1, 1]} : vector<8x32xf32> to vector<8x4xf32>
    %66 = arith.cmpf ogt, %65, %62 : vector<8x4xf32>
    %67 = arith.select %66, %65, %62 : vector<8x4xi1>, vector<8x4xf32>
    %cst_10 = arith.constant 4.000000e+00 : f32
    %68 = vector.broadcast %cst_10 : f32 to vector<8x4xf32>
    %69 = arith.select %66, %68, %64 : vector<8x4xi1>, vector<8x4xf32>
    %70 = vector.extract_strided_slice %47 {offsets = [0, 20], sizes = [8, 4], strides = [1, 1]} : vector<8x32xf32> to vector<8x4xf32>
    %71 = arith.cmpf ogt, %70, %67 : vector<8x4xf32>
    %72 = arith.select %71, %70, %67 : vector<8x4xi1>, vector<8x4xf32>
    %cst_11 = arith.constant 5.000000e+00 : f32
    %73 = vector.broadcast %cst_11 : f32 to vector<8x4xf32>
    %74 = arith.select %71, %73, %69 : vector<8x4xi1>, vector<8x4xf32>
    %75 = vector.extract_strided_slice %47 {offsets = [0, 24], sizes = [8, 4], strides = [1, 1]} : vector<8x32xf32> to vector<8x4xf32>
    %76 = arith.cmpf ogt, %75, %72 : vector<8x4xf32>
    %77 = arith.select %76, %75, %72 : vector<8x4xi1>, vector<8x4xf32>
    %cst_12 = arith.constant 6.000000e+00 : f32
    %78 = vector.broadcast %cst_12 : f32 to vector<8x4xf32>
    %79 = arith.select %76, %78, %74 : vector<8x4xi1>, vector<8x4xf32>
    %80 = vector.extract_strided_slice %47 {offsets = [0, 28], sizes = [8, 4], strides = [1, 1]} : vector<8x32xf32> to vector<8x4xf32>
    %81 = arith.cmpf ogt, %80, %77 : vector<8x4xf32>
    %cst_13 = arith.constant 7.000000e+00 : f32
    %82 = vector.broadcast %cst_13 : f32 to vector<8x4xf32>
    %83 = arith.select %81, %82, %79 : vector<8x4xi1>, vector<8x4xf32>
    %84 = arith.truncf %83 : vector<8x4xf32> to vector<8x4xbf16>
    %c0_14 = arith.constant 0 : index
    %c0_15 = arith.constant 0 : index
    %85 = vector.load %arg4[%c0_14, %c0_15] : memref<4x32xbf16, #tpu.memory_space<vmem>>, vector<4x32xbf16>
    %cst_16 = arith.constant dense<0.000000e+00> : vector<8x32xf32>
    %86 = tpu.matmul %84, %85, %cst_16 {dimension_numbers = #tpu.dot_dimension_numbers<[1], [0], [0], [1], [0, 0, 1, 1], [], []>} : vector<8x4xbf16>, vector<4x32xbf16>, vector<8x32xf32> -> vector<8x32xf32>
    %c0_17 = arith.constant 0 : index
    %c0_18 = arith.constant 0 : index
    %87 = vector.load %arg5[%c0_17, %c0_18] : memref<1x32xf32, #tpu.memory_space<vmem>>, vector<1x32xf32>
    %88 = vector.broadcast %87 : vector<1x32xf32> to vector<8x32xf32>
    %89 = arith.cmpf oeq, %88, %86 : vector<8x32xf32>
    %90 = arith.extui %89 : vector<8x32xi1> to vector<8x32xi32>
    %91 = arith.sitofp %90 : vector<8x32xi32> to vector<8x32xf32>
    %92 = vector.extract_strided_slice %91 {offsets = [0, 0], sizes = [4, 32], strides = [1, 1]} : vector<8x32xf32> to vector<4x32xf32>
    %c0_19 = arith.constant 0 : index
    %c0_20 = arith.constant 0 : index
    %c0_21 = arith.constant 0 : index
    %93 = vector.load %arg6[%c0_19, %c0_20, %c0_21] : memref<2x4x32xf32, #tpu.memory_space<vmem>>, vector<1x4x32xf32>
    %94 = vector.shape_cast %93 : vector<1x4x32xf32> to vector<4x32xf32>
    %95 = vector.shape_cast %92 : vector<4x32xf32> to vector<1x4x32xf32>
    tpu.vector_store %arg6[%c0_19, %c0_20, %c0_21], %95 {strides = array<i32>} : memref<2x4x32xf32, #tpu.memory_space<vmem>>, vector<1x4x32xf32>,
    %96 = vector.extract_strided_slice %91 {offsets = [4, 0], sizes = [4, 32], strides = [1, 1]} : vector<8x32xf32> to vector<4x32xf32>
    %c1 = arith.constant 1 : index
    %c0_22 = arith.constant 0 : index
    %c0_23 = arith.constant 0 : index
    %97 = vector.load %arg6[%c1, %c0_22, %c0_23] : memref<2x4x32xf32, #tpu.memory_space<vmem>>, vector<1x4x32xf32>
    %98 = vector.shape_cast %97 : vector<1x4x32xf32> to vector<4x32xf32>
    %99 = vector.shape_cast %96 : vector<4x32xf32> to vector<1x4x32xf32>
    tpu.vector_store %arg6[%c1, %c0_22, %c0_23], %99 {strides = array<i32>} : memref<2x4x32xf32, #tpu.memory_space<vmem>>, vector<1x4x32xf32>,
    return
  }
  func.func @transform_0(%arg0: i32) -> (i32, i32) {
    %c0_i32 = arith.constant 0 : i32
    %c0_i32_0 = arith.constant 0 : i32
    return %arg0, %c0_i32 : i32, i32
  }
  func.func @transform_1(%arg0: i32) -> (i32, i32) {
    %c0_i32 = arith.constant 0 : i32
    %c0_i32_0 = arith.constant 0 : i32
    %c0_i32_1 = arith.constant 0 : i32
    return %c0_i32, %c0_i32_0 : i32, i32
  }
  func.func @transform_2(%arg0: i32) -> (i32, i32) {
    %c0_i32 = arith.constant 0 : i32
    %c0_i32_0 = arith.constant 0 : i32
    %c0_i32_1 = arith.constant 0 : i32
    return %c0_i32, %c0_i32_0 : i32, i32
  }
  func.func @transform_3(%arg0: i32) -> (i32, i32) {
    %c0_i32 = arith.constant 0 : i32
    %c0_i32_0 = arith.constant 0 : i32
    %c0_i32_1 = arith.constant 0 : i32
    return %c0_i32, %c0_i32_0 : i32, i32
  }
  func.func @transform_4(%arg0: i32) -> (i32, i32) {
    %c0_i32 = arith.constant 0 : i32
    %c0_i32_0 = arith.constant 0 : i32
    %c0_i32_1 = arith.constant 0 : i32
    return %c0_i32, %c0_i32_0 : i32, i32
  }
  func.func @transform_5(%arg0: i32) -> (i32, i32, i32) {
    %c0_i32 = arith.constant 0 : i32
    %c0_i32_0 = arith.constant 0 : i32
    %c0_i32_1 = arith.constant 0 : i32
    return %arg0, %c0_i32, %c0_i32_0 : i32, i32, i32
  }
}

</mosaic_0001>

<bundles_post_ra>
// kernel: tpu_custom_call.1
= control target key start
LH: loop header
LB: loop body
LE: loop exit
PB: predicated region body
PF: predicated region fallthrough
CT: control target
= control target key end

     0   :  { %v2740_v6 = vmov 1.0|1.0   ;;  %s3504_s0 = inlined_call_operand.vmem [shape: s8[256,128], index: 0, kind: input, shape index: {}]   ;;  %s3505_s1 = inlined_call_operand.vmem [shape: bf16[8,256], index: 1, kind: input, shape index: {}]   ;;  %s3506_s2 = inlined_call_operand.vmem [shape: bf16[1024,32], index: 2, kind: input, shape index: {}]   ;;  %s3507_s3 = inlined_call_operand.vmem [shape: bf16[4,32], index: 3, kind: input, shape index: {}]   ;;  %s3508_s4 = inlined_call_operand.vmem [shape: f32[1,32], index: 4, kind: input, shape index: {}]   ;;  %s3509_s5 = inlined_call_operand.hbm [shape: f32[2,4,32], index: 5, kind: output, shape index: {}]  }
   0x1   :  { %v22_v0 = vld [vmem:[%s3504_s0] sm:$0xff]  ;;  %v23_v5 = vld [vmem:[%s3504_s0 + $0x8] sm:$0xff]  ;;  %v24_v11 = vld [vmem:[%s3504_s0 + $0x10] sm:$0xff] }
   0x2   :  { %v2780_v1 = vunpack.c.0.s8 %v22_v0  ;;  %v2782_v2 = vunpack.c.1.s8 %v22_v0  ;;  %v2784_v3 = vunpack.c.2.s8 %v22_v0  ;;  %v2786_v4 = vunpack.c.3.s8 %v22_v0  ;;  %v25_v16 = vld [vmem:[%s3504_s0 + $0x18] sm:$0xff]  ;;  %v26_v21 = vld [vmem:[%s3504_s0 + $0x20] sm:$0xff]  ;;  %v27_v26 = vld [vmem:[%s3504_s0 + $0x28] sm:$0xff] }
   0x3   :  { %v2802_v7 = vunpack.c.0.s8 %v23_v5  ;;  %v2804_v8 = vunpack.c.1.s8 %v23_v5  ;;  %v2818_v9 = vunpack.c.2.s8 %v23_v5  ;;  %v2820_v10 = vunpack.c.3.s8 %v23_v5  ;;  %v2952_v29 = vld [vmem:[%s3505_s1] sm:$0xff]  ;;  %v28_v33 = vld [vmem:[%s3504_s0 + $0x30] sm:$0xff]  ;;  %v29_v38 = vld [vmem:[%s3504_s0 + $0x38] sm:$0xff] }
   0x4   :  { %vm174_vm0 = vcmp.eq.s32.totalorder %v2780_v1, 1  ;;  %vm175_vm1 = vcmp.eq.s32.totalorder %v2782_v2, 1  ;;  %vm398_vm2 = vcmp.eq.s32.totalorder %v2780_v1, 3  ;;  %vm399_vm3 = vcmp.eq.s32.totalorder %v2782_v2, 3  ;;  %v2652_v44 = vld [vmem:[%s3506_s2 + $0x40] sm:$0xff]   ;;  %v2656_v48 = vld [vmem:[%s3506_s2 + $0x48] sm:$0xff]  }
   0x5   :  { %vm2224_vm4 = vmpackc.low %vm175_vm1, %vm174_vm0  ;;  %vm62_vm5 = vcmp.eq.s32.totalorder %v2780_v1, 0  ;;  %vm63_vm6 = vcmp.eq.s32.totalorder %v2782_v2, 0  ;;  %vm286_vm7 = vcmp.eq.s32.totalorder %v2780_v1, 2  ;;  %vm287_vm8 = vcmp.eq.s32.totalorder %v2782_v2, 2  ;;  %v2653_v45 = vld [vmem:[%s3506_s2 + $0xc0] sm:$0xff]  }
   0x6   :  { %2225 = vmatprep.subr.msk.bf16.mxu0 %vm2224_vm4, %v2740_v6  ;;  %vm2288_vm9 = vmpackc.low %vm399_vm3, %vm398_vm2  ;;  %vm176_vm10 = vcmp.eq.s32.totalorder %v2784_v3, 1  ;;  %vm177_vm11 = vcmp.eq.s32.totalorder %v2786_v4, 1  ;;  %vm400_vm13 = vcmp.eq.s32.totalorder %v2784_v3, 3  ;;  %vm401_vm14 = vcmp.eq.s32.totalorder %v2786_v4, 3  ;;  %v2654_v46 = vld [vmem:[%s3506_s2] sm:$0xff]  }
   0x7   :  { %2289 = vmatprep.subr.msk.bf16.mxu1 %vm2288_vm9, %v2740_v6  ;;  %vm2226_vm12 = vmpackc.low %vm63_vm6, %vm62_vm5  ;;  %vm64_vm0 = vcmp.eq.s32.totalorder %v2784_v3, 0  ;;  %vm65_vm1 = vcmp.eq.s32.totalorder %v2786_v4, 0  ;;  %vm288_vm3 = vcmp.eq.s32.totalorder %v2784_v3, 2  ;;  %vm289_vm4 = vcmp.eq.s32.totalorder %v2786_v4, 2  ;;  %v2655_v47 = vld [vmem:[%s3506_s2 + $0x80] sm:$0xff]  }
   0x8   :  { %2227 = vmatpush1.bf16.msk.msra.mxu0 %vm2226_vm12, %v2740_v6  ;;  %vm2290_vm15 = vmpackc.low %vm287_vm8, %vm286_vm7  ;;  %vm178_vm6 = vcmp.eq.s32.totalorder %v2802_v7, 1  ;;  %vm179_vm9 = vcmp.eq.s32.totalorder %v2804_v8, 1  ;;  %vm402_vm8 = vcmp.eq.s32.totalorder %v2802_v7, 3  ;;  %vm66_vm12 = vcmp.eq.s32.totalorder %v2802_v7, 0 }
   0x9   :  { %2291 = vmatpush1.bf16.msk.msra.mxu1 %vm2290_vm15, %v2740_v6  ;;  %vm2228_vm2 = vmpackc.low %vm177_vm11, %vm176_vm10  ;;  %vm403_vm10 = vcmp.eq.s32.totalorder %v2804_v8, 3  ;;  %vm290_vm15 = vcmp.eq.s32.totalorder %v2802_v7, 2  ;;  %v2837_v12 = vunpack.c.0.s8 %v24_v11  ;;  %v2839_v13 = vunpack.c.1.s8 %v24_v11 }
   0xa   :  { %2229 = vmatprep.subr.msk.bf16.mxu0 %vm2228_vm2, %v2740_v6  ;;  %vm2292_vm5 = vmpackc.low %vm401_vm14, %vm400_vm13  ;;  %vm67_vm13 = vcmp.eq.s32.totalorder %v2804_v8, 0  ;;  %vm180_vm2 = vcmp.eq.s32.totalorder %v2818_v9, 1  ;;  %v2853_v14 = vunpack.c.2.s8 %v24_v11  ;;  %v2855_v15 = vunpack.c.3.s8 %v24_v11 }
   0xb   :  { %2293 = vmatprep.subr.msk.bf16.mxu1 %vm2292_vm5, %v2740_v6  ;;  %vm2230_vm7 = vmpackc.low %vm65_vm1, %vm64_vm0  ;;  %vm291_vm0 = vcmp.eq.s32.totalorder %v2804_v8, 2  ;;  %vm181_vm5 = vcmp.eq.s32.totalorder %v2820_v10, 1  ;;  %v2872_v17 = vunpack.c.0.s8 %v25_v16  ;;  %v2874_v18 = vunpack.c.1.s8 %v25_v16 }
   0xc   :  { %2231 = vmatpush1.bf16.msk.msra.mxu0 %vm2230_vm7, %v2740_v6  ;;  %vm2294_vm11 = vmpackc.low %vm289_vm4, %vm288_vm3  ;;  %vm404_vm4 = vcmp.eq.s32.totalorder %v2818_v9, 3  ;;  %vm68_vm7 = vcmp.eq.s32.totalorder %v2818_v9, 0  ;;  %v2888_v19 = vunpack.c.2.s8 %v25_v16  ;;  %v2890_v20 = vunpack.c.3.s8 %v25_v16 }
   0xd   :  { %2295 = vmatpush1.bf16.msk.msra.mxu1 %vm2294_vm11, %v2740_v6  ;;  %vm2232_vm14 = vmpackc.low %vm179_vm9, %vm178_vm6  ;;  %vm405_vm6 = vcmp.eq.s32.totalorder %v2820_v10, 3  ;;  %vm292_vm11 = vcmp.eq.s32.totalorder %v2818_v9, 2  ;;  %v2907_v22 = vunpack.c.0.s8 %v26_v21  ;;  %v2909_v23 = vunpack.c.1.s8 %v26_v21 }
   0xe   :  { %2233 = vmatprep.subr.msk.bf16.mxu0 %vm2232_vm14, %v2740_v6  ;;  %vm2296_vm1 = vmpackc.low %vm403_vm10, %vm402_vm8  ;;  %vm69_vm8 = vcmp.eq.s32.totalorder %v2820_v10, 0  ;;  %vm293_vm14 = vcmp.eq.s32.totalorder %v2820_v10, 2  ;;  %v2923_v24 = vunpack.c.2.s8 %v26_v21  ;;  %v2925_v25 = vunpack.c.3.s8 %v26_v21 }
   0xf   :  { %2297 = vmatprep.subr.msk.bf16.mxu1 %vm2296_vm1, %v2740_v6  ;;  %vm2234_vm3 = vmpackc.low %vm67_vm13, %vm66_vm12  ;;  %vm182_vm13 = vcmp.eq.s32.totalorder %v2837_v12, 1  ;;  %vm183_vm1 = vcmp.eq.s32.totalorder %v2839_v13, 1  ;;  %v2942_v27 = vunpack.c.0.s8 %v27_v26  ;;  %v2944_v28 = vunpack.c.1.s8 %v27_v26 }
  0x10   :  { %2235 = vmatpush1.bf16.msk.msra.mxu0 %vm2234_vm3, %v2740_v6  ;;  %vm2298_vm9 = vmpackc.low %vm291_vm0, %vm290_vm15  ;;  %vm406_vm0 = vcmp.eq.s32.totalorder %v2837_v12, 3  ;;  %vm70_vm3 = vcmp.eq.s32.totalorder %v2837_v12, 0  ;;  %v2960_v30 = vunpack.c.2.s8 %v27_v26  ;;  %v2965_v31 = vunpack.c.3.s8 %v27_v26 }
  0x11   :  { %2299 = vmatpush1.bf16.msk.msra.mxu1 %vm2298_vm9, %v2740_v6  ;;  %vm2236_vm10 = vmpackc.low %vm181_vm5, %vm180_vm2  ;;  %vm407_vm2 = vcmp.eq.s32.totalorder %v2839_v13, 3  ;;  %vm294_vm9 = vcmp.eq.s32.totalorder %v2837_v12, 2  ;;  %v2969_v32 = vcombine.high %v2952_v29, %v2952_v29  ;;  %v2992_v34 = vunpack.c.0.s8 %v28_v33 }
  0x12   :  { %2237 = vmatprep.subr.msk.bf16.mxu0 %vm2236_vm10, %v2740_v6  ;;  %vm2300_vm12 = vmpackc.low %vm405_vm6, %vm404_vm4  ;;  %vm71_vm4 = vcmp.eq.s32.totalorder %v2839_v13, 0  ;;  %vm184_vm10 = vcmp.eq.s32.totalorder %v2853_v14, 1  ;;  %v2994_v35 = vunpack.c.1.s8 %v28_v33  ;;  %v3010_v36 = vunpack.c.2.s8 %v28_v33 }
  0x13   :  { %2301 = vmatprep.subr.msk.bf16.mxu1 %vm2300_vm12, %v2740_v6  ;;  %vm2238_vm15 = vmpackc.low %vm69_vm8, %vm68_vm7  ;;  %vm295_vm7 = vcmp.eq.s32.totalorder %v2839_v13, 2  ;;  %vm185_vm12 = vcmp.eq.s32.totalorder %v2855_v15, 1  ;;  %998 = vmatprep.mubr.bf16.mxu0 %v2969_v32  ;;  %v3012_v37 = vunpack.c.3.s8 %v28_v33  ;;  %v3029_v39 = vunpack.c.0.s8 %v29_v38 }
  0x14   :  { %2239 = vmatpush1.bf16.msk.msra.mxu0 %vm2238_vm15, %v2740_v6  ;;  %vm2302_vm5 = vmpackc.low %vm293_vm14, %vm292_vm11  ;;  %vm408_vm14 = vcmp.eq.s32.totalorder %v2853_v14, 3  ;;  %vm72_vm15 = vcmp.eq.s32.totalorder %v2853_v14, 0  ;;  %1039 = vmatprep.mubr.bf16.mxu1 %v2969_v32  ;;  %v3031_v40 = vunpack.c.1.s8 %v29_v38  ;;  %v3045_v41 = vunpack.c.2.s8 %v29_v38 }
  0x15   :  { %2303 = vmatpush1.bf16.msk.msra.mxu1 %vm2302_vm5, %v2740_v6  ;;  %vm2240_vm6 = vmpackc.low %vm183_vm1, %vm182_vm13  ;;  %vm409_vm13 = vcmp.eq.s32.totalorder %v2855_v15, 3  ;;  %vm296_vm5 = vcmp.eq.s32.totalorder %v2853_v14, 2  ;;  %v3047_v42 = vunpack.c.3.s8 %v29_v38  ;;  %v3076_v43 = vcombine.low %v2952_v29, %v2952_v29 }
  0x16   :  { %2241 = vmatprep.subr.msk.bf16.mxu0 %vm2240_vm6, %v2740_v6  ;;  %vm2304_vm8 = vmpackc.low %vm407_vm2, %vm406_vm0  ;;  %vm73_vm0 = vcmp.eq.s32.totalorder %v2855_v15, 0  ;;  %vm297_vm6 = vcmp.eq.s32.totalorder %v2855_v15, 2 }
  0x17   :  { %2305 = vmatprep.subr.msk.bf16.mxu1 %vm2304_vm8, %v2740_v6  ;;  %vm2242_vm11 = vmpackc.low %vm71_vm4, %vm70_vm3  ;;  %vm186_vm4 = vcmp.eq.s32.totalorder %v2872_v17, 1  ;;  %vm187_vm8 = vcmp.eq.s32.totalorder %v2874_v18, 1 }
  0x18   :  { %2243 = vmatpush1.bf16.msk.msra.mxu0 %vm2242_vm11, %v2740_v6  ;;  %vm2306_vm1 = vmpackc.low %vm295_vm7, %vm294_vm9  ;;  %vm410_vm7 = vcmp.eq.s32.totalorder %v2872_v17, 3  ;;  %vm74_vm11 = vcmp.eq.s32.totalorder %v2872_v17, 0 }
  0x19   :  { %2307 = vmatpush1.bf16.msk.msra.mxu1 %vm2306_vm1, %v2740_v6  ;;  %vm2244_vm2 = vmpackc.low %vm185_vm12, %vm184_vm10  ;;  %vm411_vm10 = vcmp.eq.s32.totalorder %v2874_v18, 3  ;;  %vm298_vm1 = vcmp.eq.s32.totalorder %v2872_v17, 2 }
  0x1a   :  { %2245 = vmatprep.subr.msk.bf16.mxu0 %vm2244_vm2, %v2740_v6  ;;  %vm2308_vm3 = vmpackc.low %vm409_vm13, %vm408_vm14  ;;  %vm75_vm14 = vcmp.eq.s32.totalorder %v2874_v18, 0  ;;  %vm188_vm2 = vcmp.eq.s32.totalorder %v2888_v19, 1 }
  0x1b   :  { %2309 = vmatprep.subr.msk.bf16.mxu1 %vm2308_vm3, %v2740_v6  ;;  %vm2246_vm9 = vmpackc.low %vm73_vm0, %vm72_vm15  ;;  %vm299_vm15 = vcmp.eq.s32.totalorder %v2874_v18, 2  ;;  %vm189_vm3 = vcmp.eq.s32.totalorder %v2890_v20, 1 }
  0x1c   :  { %2247 = vmatpush1.bf16.msk.msra.mxu0 %vm2246_vm9, %v2740_v6  ;;  %vm2310_vm12 = vmpackc.low %vm297_vm6, %vm296_vm5  ;;  %vm412_vm6 = vcmp.eq.s32.totalorder %v2888_v19, 3  ;;  %vm76_vm9 = vcmp.eq.s32.totalorder %v2888_v19, 0 }
  0x1d   :  { %2311 = vmatpush1.bf16.msk.msra.mxu1 %vm2310_vm12, %v2740_v6  ;;  %vm2248_vm13 = vmpackc.low %vm187_vm8, %vm186_vm4  ;;  %vm413_vm4 = vcmp.eq.s32.totalorder %v2890_v20, 3  ;;  %vm300_vm12 = vcmp.eq.s32.totalorder %v2888_v19, 2 }
  0x1e   :  { %2249 = vmatprep.subr.msk.bf16.mxu0 %vm2248_vm13, %v2740_v6  ;;  %vm2312_vm0 = vmpackc.low %vm411_vm10, %vm410_vm7  ;;  %vm77_vm7 = vcmp.eq.s32.totalorder %v2890_v20, 0  ;;  %vm301_vm13 = vcmp.eq.s32.totalorder %v2890_v20, 2 }
  0x1f   :  { %2313 = vmatprep.subr.msk.bf16.mxu1 %vm2312_vm0, %v2740_v6  ;;  %vm2250_vm5 = vmpackc.low %vm75_vm14, %vm74_vm11  ;;  %vm190_vm14 = vcmp.eq.s32.totalorder %v2907_v22, 1  ;;  %vm191_vm0 = vcmp.eq.s32.totalorder %v2909_v23, 1 }
  0x20   :  { %2251 = vmatpush1.bf16.msk.msra.mxu0 %vm2250_vm5, %v2740_v6  ;;  %vm2314_vm8 = vmpackc.low %vm299_vm15, %vm298_vm1  ;;  %vm414_vm15 = vcmp.eq.s32.totalorder %v2907_v22, 3  ;;  %vm78_vm5 = vcmp.eq.s32.totalorder %v2907_v22, 0 }
  0x21   :  { %2315 = vmatpush1.bf16.msk.msra.mxu1 %vm2314_vm8, %v2740_v6  ;;  %vm2252_vm10 = vmpackc.low %vm189_vm3, %vm188_vm2  ;;  %vm415_vm2 = vcmp.eq.s32.totalorder %v2909_v23, 3  ;;  %vm302_vm8 = vcmp.eq.s32.totalorder %v2907_v22, 2 }
  0x22   :  { %2253 = vmatprep.subr.msk.bf16.mxu0 %vm2252_vm10, %v2740_v6  ;;  %vm2316_vm11 = vmpackc.low %vm413_vm4, %vm412_vm6  ;;  %vm79_vm6 = vcmp.eq.s32.totalorder %v2909_v23, 0  ;;  %vm192_vm10 = vcmp.eq.s32.totalorder %v2923_v24, 1 }
  0x23   :  { %2317 = vmatprep.subr.msk.bf16.mxu1 %vm2316_vm11, %v2740_v6  ;;  %vm2254_vm1 = vmpackc.low %vm77_vm7, %vm76_vm9  ;;  %vm303_vm9 = vcmp.eq.s32.totalorder %v2909_v23, 2  ;;  %vm193_vm11 = vcmp.eq.s32.totalorder %v2925_v25, 1 }
  0x24   :  { %2255 = vmatpush1.bf16.msk.msra.mxu0 %vm2254_vm1, %v2740_v6  ;;  %vm2318_vm3 = vmpackc.low %vm301_vm13, %vm300_vm12  ;;  %vm416_vm13 = vcmp.eq.s32.totalorder %v2923_v24, 3  ;;  %vm80_vm1 = vcmp.eq.s32.totalorder %v2923_v24, 0 }
  0x25   :  { %2319 = vmatpush1.bf16.msk.msra.mxu1 %vm2318_vm3, %v2740_v6  ;;  %vm2256_vm4 = vmpackc.low %vm191_vm0, %vm190_vm14  ;;  %vm417_vm14 = vcmp.eq.s32.totalorder %v2925_v25, 3  ;;  %vm304_vm3 = vcmp.eq.s32.totalorder %v2923_v24, 2 }
  0x26   :  { %2257 = vmatprep.subr.msk.bf16.mxu0 %vm2256_vm4, %v2740_v6  ;;  %vm2320_vm7 = vmpackc.low %vm415_vm2, %vm414_vm15  ;;  %vm81_vm15 = vcmp.eq.s32.totalorder %v2925_v25, 0  ;;  %vm194_vm4 = vcmp.eq.s32.totalorder %v2942_v27, 1 }
  0x27   :  { %2321 = vmatprep.subr.msk.bf16.mxu1 %vm2320_vm7, %v2740_v6  ;;  %vm2258_vm12 = vmpackc.low %vm79_vm6, %vm78_vm5  ;;  %vm305_vm5 = vcmp.eq.s32.totalorder %v2925_v25, 2  ;;  %vm418_vm7 = vcmp.eq.s32.totalorder %v2942_v27, 3 }
  0x28   :  { %2259 = vmatpush1.bf16.msk.msra.mxu0 %vm2258_vm12, %v2740_v6  ;;  %vm2322_vm0 = vmpackc.low %vm303_vm9, %vm302_vm8  ;;  %vm195_vm8 = vcmp.eq.s32.totalorder %v2944_v28, 1  ;;  %vm82_vm12 = vcmp.eq.s32.totalorder %v2942_v27, 0 }
  0x29   :  { %2323 = vmatpush1.bf16.msk.msra.mxu1 %vm2322_vm0, %v2740_v6  ;;  %vm2260_vm2 = vmpackc.low %vm193_vm11, %vm192_vm10  ;;  %vm419_vm10 = vcmp.eq.s32.totalorder %v2944_v28, 3  ;;  %vm306_vm0 = vcmp.eq.s32.totalorder %v2942_v27, 2 }
  0x2a   :  { %2261 = vmatprep.subr.msk.bf16.mxu0 %vm2260_vm2, %v2740_v6  ;;  %vm2324_vm6 = vmpackc.low %vm417_vm14, %vm416_vm13  ;;  %vm83_vm13 = vcmp.eq.s32.totalorder %v2944_v28, 0  ;;  %vm196_vm2 = vcmp.eq.s32.totalorder %v2960_v30, 1 }
  0x2b   :  { %2325 = vmatprep.subr.msk.bf16.mxu1 %vm2324_vm6, %v2740_v6  ;;  %vm2262_vm9 = vmpackc.low %vm81_vm15, %vm80_vm1  ;;  %vm307_vm1 = vcmp.eq.s32.totalorder %v2944_v28, 2  ;;  %vm420_vm6 = vcmp.eq.s32.totalorder %v2960_v30, 3 }
  0x2c   :  { %2263 = vmatpush1.bf16.msk.msra.mxu0 %vm2262_vm9, %v2740_v6  ;;  %vm2326_vm11 = vmpackc.low %vm305_vm5, %vm304_vm3  ;;  %vm197_vm3 = vcmp.eq.s32.totalorder %v2965_v31, 1  ;;  %vm84_vm9 = vcmp.eq.s32.totalorder %v2960_v30, 0 }
  0x2d   :  { %2327 = vmatpush1.bf16.msk.msra.mxu1 %vm2326_vm11, %v2740_v6  ;;  %vm2264_vm14 = vmpackc.low %vm195_vm8, %vm194_vm4  ;;  %vm421_vm4 = vcmp.eq.s32.totalorder %v2965_v31, 3  ;;  %vm308_vm11 = vcmp.eq.s32.totalorder %v2960_v30, 2 }
  0x2e   :  { %2265 = vmatprep.subr.msk.bf16.mxu0 %vm2264_vm14, %v2740_v6  ;;  %vm2328_vm15 = vmpackc.low %vm419_vm10, %vm418_vm7  ;;  %vm85_vm7 = vcmp.eq.s32.totalorder %v2965_v31, 0  ;;  %vm309_vm14 = vcmp.eq.s32.totalorder %v2965_v31, 2 }
  0x2f   :  { %2329 = vmatprep.subr.msk.bf16.mxu1 %vm2328_vm15, %v2740_v6  ;;  %vm2266_vm5 = vmpackc.low %vm83_vm13, %vm82_vm12  ;;  %vm198_vm13 = vcmp.eq.s32.totalorder %v2992_v34, 1  ;;  %vm199_vm15 = vcmp.eq.s32.totalorder %v2994_v35, 1 }
  0x30   :  { %2267 = vmatpush1.bf16.msk.msra.mxu0 %vm2266_vm5, %v2740_v6  ;;  %vm2330_vm8 = vmpackc.low %vm307_vm1, %vm306_vm0  ;;  %vm422_vm1 = vcmp.eq.s32.totalorder %v2992_v34, 3  ;;  %vm86_vm5 = vcmp.eq.s32.totalorder %v2992_v34, 0 }
  0x31   :  { %2331 = vmatpush1.bf16.msk.msra.mxu1 %vm2330_vm8, %v2740_v6  ;;  %vm2268_vm10 = vmpackc.low %vm197_vm3, %vm196_vm2  ;;  %vm423_vm2 = vcmp.eq.s32.totalorder %v2994_v35, 3  ;;  %vm310_vm8 = vcmp.eq.s32.totalorder %v2992_v34, 2 }
  0x32   :  { %2269 = vmatprep.subr.msk.bf16.mxu0 %vm2268_vm10, %v2740_v6  ;;  %vm2332_vm12 = vmpackc.low %vm421_vm4, %vm420_vm6  ;;  %vm87_vm6 = vcmp.eq.s32.totalorder %v2994_v35, 0  ;;  %vm200_vm10 = vcmp.eq.s32.totalorder %v3010_v36, 1 }
  0x33   :  { %2333 = vmatprep.subr.msk.bf16.mxu1 %vm2332_vm12, %v2740_v6  ;;  %vm2270_vm0 = vmpackc.low %vm85_vm7, %vm84_vm9  ;;  %vm311_vm9 = vcmp.eq.s32.totalorder %v2994_v35, 2  ;;  %vm201_vm12 = vcmp.eq.s32.totalorder %v3012_v37, 1 }
  0x34   :  { %2271 = vmatpush1.bf16.msk.msra.mxu0 %vm2270_vm0, %v2740_v6  ;;  %vm2334_vm3 = vmpackc.low %vm309_vm14, %vm308_vm11  ;;  %vm424_vm14 = vcmp.eq.s32.totalorder %v3010_v36, 3  ;;  %vm88_vm0 = vcmp.eq.s32.totalorder %v3010_v36, 0 }
  0x35   :  { %2335 = vmatpush1.bf16.msk.msra.mxu1 %vm2334_vm3, %v2740_v6  ;;  %vm2272_vm4 = vmpackc.low %vm199_vm15, %vm198_vm13  ;;  %vm425_vm13 = vcmp.eq.s32.totalorder %v3012_v37, 3  ;;  %vm312_vm3 = vcmp.eq.s32.totalorder %v3010_v36, 2 }
  0x36   :  { %2273 = vmatprep.subr.msk.bf16.mxu0 %vm2272_vm4, %v2740_v6  ;;  %vm2336_vm7 = vmpackc.low %vm423_vm2, %vm422_vm1  ;;  %vm89_vm1 = vcmp.eq.s32.totalorder %v3012_v37, 0  ;;  %vm313_vm4 = vcmp.eq.s32.totalorder %v3012_v37, 2 }
  0x37   :  { %2337 = vmatprep.subr.msk.bf16.mxu1 %vm2336_vm7, %v2740_v6  ;;  %vm2274_vm11 = vmpackc.low %vm87_vm6, %vm86_vm5  ;;  %vm202_vm6 = vcmp.eq.s32.totalorder %v3029_v39, 1  ;;  %vm203_vm7 = vcmp.eq.s32.totalorder %v3031_v40, 1 }
  0x38   :  { %2275 = vmatpush1.bf16.msk.msra.mxu0 %vm2274_vm11, %v2740_v6  ;;  %vm2338_vm15 = vmpackc.low %vm311_vm9, %vm310_vm8  ;;  %vm426_vm9 = vcmp.eq.s32.totalorder %v3029_v39, 3  ;;  %vm90_vm11 = vcmp.eq.s32.totalorder %v3029_v39, 0 }
  0x39   :  { %2339 = vmatpush1.bf16.msk.msra.mxu1 %vm2338_vm15, %v2740_v6  ;;  %vm2276_vm2 = vmpackc.low %vm201_vm12, %vm200_vm10  ;;  %vm427_vm10 = vcmp.eq.s32.totalorder %v3031_v40, 3  ;;  %vm314_vm15 = vcmp.eq.s32.totalorder %v3029_v39, 2 }
  0x3a   :  { %2277 = vmatprep.subr.msk.bf16.mxu0 %vm2276_vm2, %v2740_v6  ;;  %vm2340_vm5 = vmpackc.low %vm425_vm13, %vm424_vm14  ;;  %vm91_vm14 = vcmp.eq.s32.totalorder %v3031_v40, 0  ;;  %vm315_vm2 = vcmp.eq.s32.totalorder %v3031_v40, 2 }
  0x3b   :  { %2341 = vmatprep.subr.msk.bf16.mxu1 %vm2340_vm5, %v2740_v6  ;;  %vm2278_vm8 = vmpackc.low %vm89_vm1, %vm88_vm0  ;;  %vm204_vm1 = vcmp.eq.s32.totalorder %v3045_v41, 1  ;;  %vm205_vm5 = vcmp.eq.s32.totalorder %v3047_v42, 1 }
  0x3c   :  { %2279 = vmatpush1.bf16.msk.msra.mxu0 %vm2278_vm8, %v2740_v6  ;;  %vm2342_vm12 = vmpackc.low %vm313_vm4, %vm312_vm3  ;;  %vm428_vm4 = vcmp.eq.s32.totalorder %v3045_v41, 3  ;;  %vm429_vm8 = vcmp.eq.s32.totalorder %v3047_v42, 3 }
  0x3d   :  { %2343 = vmatpush1.bf16.msk.msra.mxu1 %vm2342_vm12, %v2740_v6  ;;  %vm2280_vm13 = vmpackc.low %vm203_vm7, %vm202_vm6  ;;  %vm92_vm7 = vcmp.eq.s32.totalorder %v3045_v41, 0  ;;  %vm93_vm12 = vcmp.eq.s32.totalorder %v3047_v42, 0 }
  0x3e   :  { %2281 = vmatprep.subr.msk.bf16.mxu0 %vm2280_vm13, %v2740_v6  ;;  %vm2344_vm0 = vmpackc.low %vm427_vm10, %vm426_vm9  ;;  %vm316_vm10 = vcmp.eq.s32.totalorder %v3045_v41, 2  ;;  %vm317_vm13 = vcmp.eq.s32.totalorder %v3047_v42, 2 }
  0x3f   :  { %2345 = vmatprep.subr.msk.bf16.mxu1 %vm2344_vm0, %v2740_v6  ;;  %vm2282_vm3 = vmpackc.low %vm91_vm14, %vm90_vm11  ;;  %vm622_vm14 = vcmp.eq.s32.totalorder %v2780_v1, 5  ;;  %vm623_vm0 = vcmp.eq.s32.totalorder %v2782_v2, 5 }
  0x40   :  { %2283 = vmatpush1.bf16.msk.msra.mxu0 %vm2282_vm3, %v2740_v6  ;;  %vm2346_vm6 = vmpackc.low %vm315_vm2, %vm314_vm15  ;;  %vm846_vm2 = vcmp.eq.s32.totalorder %v2780_v1, 7  ;;  %vm510_vm3 = vcmp.eq.s32.totalorder %v2780_v1, 4 }
  0x41   :  { %2347 = vmatpush1.bf16.msk.msra.mxu1 %vm2346_vm6, %v2740_v6  ;;  %vm2284_vm9 = vmpackc.low %vm205_vm5, %vm204_vm1  ;;  %vm847_vm1 = vcmp.eq.s32.totalorder %v2782_v2, 7  ;;  %vm734_vm6 = vcmp.eq.s32.totalorder %v2780_v1, 6 }
  0x42   :  { %2285 = vmatprep.subr.msk.bf16.mxu0 %vm2284_vm9, %v2740_v6  ;;  %vm2348_vm11 = vmpackc.low %vm429_vm8, %vm428_vm4  ;;  %vm511_vm4 = vcmp.eq.s32.totalorder %v2782_v2, 4  ;;  %vm624_vm9 = vcmp.eq.s32.totalorder %v2784_v3, 5 }
  0x43   :  { %2349 = vmatprep.subr.msk.bf16.mxu1 %vm2348_vm11, %v2740_v6  ;;  %vm2286_vm15 = vmpackc.low %vm93_vm12, %vm92_vm7  ;;  %vm735_vm7 = vcmp.eq.s32.totalorder %v2782_v2, 6  ;;  %vm625_vm11 = vcmp.eq.s32.totalorder %v2786_v4, 5 }
  0x44   :  { %2287 = vmatpush1.bf16.msk.msra.mxu0 %vm2286_vm15, %v2740_v6  ;;  %vm2350_vm5 = vmpackc.low %vm317_vm13, %vm316_vm10  ;;  %vm848_vm13 = vcmp.eq.s32.totalorder %v2784_v3, 7  ;;  %vm512_vm15 = vcmp.eq.s32.totalorder %v2784_v3, 4 }
  0x45   :  { %2351 = vmatpush1.bf16.msk.msra.mxu1 %vm2350_vm5, %v2740_v6  ;;  %vm2352_vm8 = vmpackc.low %vm623_vm0, %vm622_vm14  ;;  %vm849_vm14 = vcmp.eq.s32.totalorder %v2786_v4, 7  ;;  %vm736_vm5 = vcmp.eq.s32.totalorder %v2784_v3, 6 }
  0x46   :  { %2353 = vmatprep.subr.msk.bf16.mxu0 %vm2352_vm8, %v2740_v6  ;;  %vm2416_vm12 = vmpackc.low %vm847_vm1, %vm846_vm2  ;;  %vm513_vm2 = vcmp.eq.s32.totalorder %v2786_v4, 4  ;;  %vm626_vm8 = vcmp.eq.s32.totalorder %v2802_v7, 5 }
  0x47   :  { %999 = vmatmul.mubr.bf16.vlgmr.msra.gmra.mrb[0].mxu0 %v3076_v43  ;;  %2417 = vmatprep.subr.msk.bf16.mxu1 %vm2416_vm12, %v2740_v6  ;;  %vm2354_vm10 = vmpackc.low %vm511_vm4, %vm510_vm3  ;;  %vm737_vm3 = vcmp.eq.s32.totalorder %v2786_v4, 6  ;;  %vm850_vm12 = vcmp.eq.s32.totalorder %v2802_v7, 7 }
  0x48   :  { %1040 = vmatmul.mubr.bf16.vlgmr.msra.gmra.mrb[0].mxu1 %v3076_v43  ;;  %2355 = vmatpush1.bf16.msk.msra.mxu0 %vm2354_vm10, %v2740_v6  ;;  %vm2418_vm0 = vmpackc.low %vm735_vm7, %vm734_vm6  ;;  %vm627_vm6 = vcmp.eq.s32.totalorder %v2804_v8, 5  ;;  %vm514_vm10 = vcmp.eq.s32.totalorder %v2802_v7, 4 }
  0x49   :  { %2419 = vmatpush1.bf16.msk.msra.mxu1 %vm2418_vm0, %v2740_v6  ;;  %vm2356_vm1 = vmpackc.low %vm625_vm11, %vm624_vm9  ;;  %1080 = vmatprep.mubr.bf16.mxu0 %v2969_v32  ;;  %vm851_vm9 = vcmp.eq.s32.totalorder %v2804_v8, 7  ;;  %vm738_vm0 = vcmp.eq.s32.totalorder %v2802_v7, 6 }
  0x4a   :  { %2357 = vmatprep.subr.msk.bf16.mxu0 %vm2356_vm1, %v2740_v6  ;;  %vm2420_vm4 = vmpackc.low %vm849_vm14, %vm848_vm13  ;;  %1121 = vmatprep.mubr.bf16.mxu1 %v2969_v32  ;;  %vm515_vm13 = vcmp.eq.s32.totalorder %v2804_v8, 4  ;;  %vm739_vm1 = vcmp.eq.s32.totalorder %v2804_v8, 6 }
  0x4b   :  { %2421 = vmatprep.subr.msk.bf16.mxu1 %vm2420_vm4, %v2740_v6  ;;  %vm2358_vm7 = vmpackc.low %vm513_vm2, %vm512_vm15  ;;  %vm628_vm2 = vcmp.eq.s32.totalorder %v2818_v9, 5  ;;  %vm629_vm4 = vcmp.eq.s32.totalorder %v2820_v10, 5 }
  0x4c   :  { %2359 = vmatpush1.bf16.msk.msra.mxu0 %vm2358_vm7, %v2740_v6  ;;  %vm2422_vm11 = vmpackc.low %vm737_vm3, %vm736_vm5  ;;  %vm852_vm3 = vcmp.eq.s32.totalorder %v2818_v9, 7  ;;  %vm853_vm7 = vcmp.eq.s32.totalorder %v2820_v10, 7 }
  0x4d   :  { %2423 = vmatpush1.bf16.msk.msra.mxu1 %vm2422_vm11, %v2740_v6  ;;  %vm2360_vm14 = vmpackc.low %vm627_vm6, %vm626_vm8  ;;  %vm516_vm6 = vcmp.eq.s32.totalorder %v2818_v9, 4  ;;  %vm517_vm11 = vcmp.eq.s32.totalorder %v2820_v10, 4 }
  0x4e   :  { %2361 = vmatprep.subr.msk.bf16.mxu0 %vm2360_vm14, %v2740_v6  ;;  %vm2424_vm15 = vmpackc.low %vm851_vm9, %vm850_vm12  ;;  %vm740_vm9 = vcmp.eq.s32.totalorder %v2818_v9, 6  ;;  %vm741_vm14 = vcmp.eq.s32.totalorder %v2820_v10, 6 }
  0x4f   :  { %2425 = vmatprep.subr.msk.bf16.mxu1 %vm2424_vm15, %v2740_v6  ;;  %vm2362_vm5 = vmpackc.low %vm515_vm13, %vm514_vm10  ;;  %vm630_vm13 = vcmp.eq.s32.totalorder %v2837_v12, 5  ;;  %vm631_vm15 = vcmp.eq.s32.totalorder %v2839_v13, 5 }
  0x50   :  { %2363 = vmatpush1.bf16.msk.msra.mxu0 %vm2362_vm5, %v2740_v6  ;;  %vm2426_vm8 = vmpackc.low %vm739_vm1, %vm738_vm0  ;;  %vm854_vm1 = vcmp.eq.s32.totalorder %v2837_v12, 7  ;;  %vm855_vm5 = vcmp.eq.s32.totalorder %v2839_v13, 7 }
  0x51   :  { %2427 = vmatpush1.bf16.msk.msra.mxu1 %vm2426_vm8, %v2740_v6  ;;  %vm2364_vm12 = vmpackc.low %vm629_vm4, %vm628_vm2  ;;  %vm518_vm4 = vcmp.eq.s32.totalorder %v2837_v12, 4  ;;  %vm519_vm8 = vcmp.eq.s32.totalorder %v2839_v13, 4 }
  0x52   :  { %2365 = vmatprep.subr.msk.bf16.mxu0 %vm2364_vm12, %v2740_v6  ;;  %vm2428_vm10 = vmpackc.low %vm853_vm7, %vm852_vm3  ;;  %vm742_vm7 = vcmp.eq.s32.totalorder %v2837_v12, 6  ;;  %vm743_vm12 = vcmp.eq.s32.totalorder %v2839_v13, 6 }
  0x53   :  { %2429 = vmatprep.subr.msk.bf16.mxu1 %vm2428_vm10, %v2740_v6  ;;  %vm2366_vm0 = vmpackc.low %vm517_vm11, %vm516_vm6  ;;  %vm632_vm11 = vcmp.eq.s32.totalorder %v2853_v14, 5  ;;  %vm633_vm10 = vcmp.eq.s32.totalorder %v2855_v15, 5 }
  0x54   :  { %2367 = vmatpush1.bf16.msk.msra.mxu0 %vm2366_vm0, %v2740_v6  ;;  %vm2430_vm2 = vmpackc.low %vm741_vm14, %vm740_vm9  ;;  %vm856_vm14 = vcmp.eq.s32.totalorder %v2853_v14, 7  ;;  %vm857_vm0 = vcmp.eq.s32.totalorder %v2855_v15, 7 }
  0x55   :  { %2431 = vmatpush1.bf16.msk.msra.mxu1 %vm2430_vm2, %v2740_v6  ;;  %vm2368_vm3 = vmpackc.low %vm631_vm15, %vm630_vm13  ;;  %vm520_vm15 = vcmp.eq.s32.totalorder %v2853_v14, 4  ;;  %vm521_vm2 = vcmp.eq.s32.totalorder %v2855_v15, 4 }
  0x56   :  { %2369 = vmatprep.subr.msk.bf16.mxu0 %vm2368_vm3, %v2740_v6  ;;  %vm2432_vm6 = vmpackc.low %vm855_vm5, %vm854_vm1  ;;  %vm744_vm5 = vcmp.eq.s32.totalorder %v2853_v14, 6  ;;  %vm745_vm3 = vcmp.eq.s32.totalorder %v2855_v15, 6 }
  0x57   :  { %2433 = vmatprep.subr.msk.bf16.mxu1 %vm2432_vm6, %v2740_v6  ;;  %vm2370_vm9 = vmpackc.low %vm519_vm8, %vm518_vm4  ;;  %vm634_vm8 = vcmp.eq.s32.totalorder %v2872_v17, 5  ;;  %vm635_vm6 = vcmp.eq.s32.totalorder %v2874_v18, 5 }
  0x58   :  { %2371 = vmatpush1.bf16.msk.msra.mxu0 %vm2370_vm9, %v2740_v6  ;;  %vm2434_vm13 = vmpackc.low %vm743_vm12, %vm742_vm7  ;;  %vm858_vm12 = vcmp.eq.s32.totalorder %v2872_v17, 7  ;;  %vm859_vm9 = vcmp.eq.s32.totalorder %v2874_v18, 7 }
  0x59   :  { %2435 = vmatpush1.bf16.msk.msra.mxu1 %vm2434_vm13, %v2740_v6  ;;  %vm2372_vm1 = vmpackc.low %vm633_vm10, %vm632_vm11  ;;  %vm522_vm10 = vcmp.eq.s32.totalorder %v2872_v17, 4  ;;  %vm523_vm13 = vcmp.eq.s32.totalorder %v2874_v18, 4 }
  0x5a   :  { %2373 = vmatprep.subr.msk.bf16.mxu0 %vm2372_vm1, %v2740_v6  ;;  %vm2436_vm4 = vmpackc.low %vm857_vm0, %vm856_vm14  ;;  %vm746_vm0 = vcmp.eq.s32.totalorder %v2872_v17, 6  ;;  %vm747_vm1 = vcmp.eq.s32.totalorder %v2874_v18, 6 }
  0x5b   :  { %2437 = vmatprep.subr.msk.bf16.mxu1 %vm2436_vm4, %v2740_v6  ;;  %vm2374_vm7 = vmpackc.low %vm521_vm2, %vm520_vm15  ;;  %vm636_vm2 = vcmp.eq.s32.totalorder %v2888_v19, 5  ;;  %vm637_vm4 = vcmp.eq.s32.totalorder %v2890_v20, 5 }
  0x5c   :  { %2375 = vmatpush1.bf16.msk.msra.mxu0 %vm2374_vm7, %v2740_v6  ;;  %vm2438_vm11 = vmpackc.low %vm745_vm3, %vm744_vm5  ;;  %vm860_vm3 = vcmp.eq.s32.totalorder %v2888_v19, 7  ;;  %vm861_vm7 = vcmp.eq.s32.totalorder %v2890_v20, 7 }
  0x5d   :  { %2439 = vmatpush1.bf16.msk.msra.mxu1 %vm2438_vm11, %v2740_v6  ;;  %vm2376_vm14 = vmpackc.low %vm635_vm6, %vm634_vm8  ;;  %vm524_vm6 = vcmp.eq.s32.totalorder %v2888_v19, 4  ;;  %vm525_vm11 = vcmp.eq.s32.totalorder %v2890_v20, 4 }
  0x5e   :  { %2377 = vmatprep.subr.msk.bf16.mxu0 %vm2376_vm14, %v2740_v6  ;;  %vm2440_vm15 = vmpackc.low %vm859_vm9, %vm858_vm12  ;;  %vm748_vm9 = vcmp.eq.s32.totalorder %v2888_v19, 6  ;;  %vm749_vm14 = vcmp.eq.s32.totalorder %v2890_v20, 6 }
  0x5f   :  { %2441 = vmatprep.subr.msk.bf16.mxu1 %vm2440_vm15, %v2740_v6  ;;  %vm2378_vm5 = vmpackc.low %vm523_vm13, %vm522_vm10  ;;  %vm638_vm13 = vcmp.eq.s32.totalorder %v2907_v22, 5  ;;  %vm639_vm15 = vcmp.eq.s32.totalorder %v2909_v23, 5 }
  0x60   :  { %2379 = vmatpush1.bf16.msk.msra.mxu0 %vm2378_vm5, %v2740_v6  ;;  %vm2442_vm8 = vmpackc.low %vm747_vm1, %vm746_vm0  ;;  %vm862_vm1 = vcmp.eq.s32.totalorder %v2907_v22, 7  ;;  %vm863_vm5 = vcmp.eq.s32.totalorder %v2909_v23, 7 }
  0x61   :  { %2443 = vmatpush1.bf16.msk.msra.mxu1 %vm2442_vm8, %v2740_v6  ;;  %vm2380_vm12 = vmpackc.low %vm637_vm4, %vm636_vm2  ;;  %vm526_vm4 = vcmp.eq.s32.totalorder %v2907_v22, 4  ;;  %vm527_vm8 = vcmp.eq.s32.totalorder %v2909_v23, 4 }
  0x62   :  { %2381 = vmatprep.subr.msk.bf16.mxu0 %vm2380_vm12, %v2740_v6  ;;  %vm2444_vm10 = vmpackc.low %vm861_vm7, %vm860_vm3  ;;  %vm750_vm7 = vcmp.eq.s32.totalorder %v2907_v22, 6  ;;  %vm751_vm12 = vcmp.eq.s32.totalorder %v2909_v23, 6 }
  0x63   :  { %2445 = vmatprep.subr.msk.bf16.mxu1 %vm2444_vm10, %v2740_v6  ;;  %vm2382_vm0 = vmpackc.low %vm525_vm11, %vm524_vm6  ;;  %vm640_vm11 = vcmp.eq.s32.totalorder %v2923_v24, 5  ;;  %vm641_vm10 = vcmp.eq.s32.totalorder %v2925_v25, 5 }
  0x64   :  { %2383 = vmatpush1.bf16.msk.msra.mxu0 %vm2382_vm0, %v2740_v6  ;;  %vm2446_vm2 = vmpackc.low %vm749_vm14, %vm748_vm9  ;;  %vm864_vm14 = vcmp.eq.s32.totalorder %v2923_v24, 7  ;;  %vm865_vm0 = vcmp.eq.s32.totalorder %v2925_v25, 7 }
  0x65   :  { %2447 = vmatpush1.bf16.msk.msra.mxu1 %vm2446_vm2, %v2740_v6  ;;  %vm2384_vm3 = vmpackc.low %vm639_vm15, %vm638_vm13  ;;  %vm528_vm15 = vcmp.eq.s32.totalorder %v2923_v24, 4  ;;  %vm529_vm2 = vcmp.eq.s32.totalorder %v2925_v25, 4 }
  0x66   :  { %2385 = vmatprep.subr.msk.bf16.mxu0 %vm2384_vm3, %v2740_v6  ;;  %vm2448_vm6 = vmpackc.low %vm863_vm5, %vm862_vm1  ;;  %vm752_vm5 = vcmp.eq.s32.totalorder %v2923_v24, 6  ;;  %vm753_vm3 = vcmp.eq.s32.totalorder %v2925_v25, 6 }
  0x67   :  { %2449 = vmatprep.subr.msk.bf16.mxu1 %vm2448_vm6, %v2740_v6  ;;  %vm2386_vm9 = vmpackc.low %vm527_vm8, %vm526_vm4  ;;  %vm642_vm8 = vcmp.eq.s32.totalorder %v2942_v27, 5  ;;  %vm643_vm6 = vcmp.eq.s32.totalorder %v2944_v28, 5 }
  0x68   :  { %2387 = vmatpush1.bf16.msk.msra.mxu0 %vm2386_vm9, %v2740_v6  ;;  %vm2450_vm13 = vmpackc.low %vm751_vm12, %vm750_vm7  ;;  %vm866_vm12 = vcmp.eq.s32.totalorder %v2942_v27, 7  ;;  %vm867_vm9 = vcmp.eq.s32.totalorder %v2944_v28, 7 }
  0x69   :  { %2451 = vmatpush1.bf16.msk.msra.mxu1 %vm2450_vm13, %v2740_v6  ;;  %vm2388_vm1 = vmpackc.low %vm641_vm10, %vm640_vm11  ;;  %vm530_vm10 = vcmp.eq.s32.totalorder %v2942_v27, 4  ;;  %vm531_vm13 = vcmp.eq.s32.totalorder %v2944_v28, 4 }
  0x6a   :  { %2389 = vmatprep.subr.msk.bf16.mxu0 %vm2388_vm1, %v2740_v6  ;;  %vm2452_vm4 = vmpackc.low %vm865_vm0, %vm864_vm14  ;;  %vm754_vm0 = vcmp.eq.s32.totalorder %v2942_v27, 6  ;;  %vm755_vm1 = vcmp.eq.s32.totalorder %v2944_v28, 6 }
  0x6b   :  { %2453 = vmatprep.subr.msk.bf16.mxu1 %vm2452_vm4, %v2740_v6  ;;  %vm2390_vm7 = vmpackc.low %vm529_vm2, %vm528_vm15  ;;  %vm644_vm2 = vcmp.eq.s32.totalorder %v2960_v30, 5  ;;  %vm645_vm4 = vcmp.eq.s32.totalorder %v2965_v31, 5 }
  0x6c   :  { %2391 = vmatpush1.bf16.msk.msra.mxu0 %vm2390_vm7, %v2740_v6  ;;  %vm2454_vm11 = vmpackc.low %vm753_vm3, %vm752_vm5  ;;  %vm868_vm3 = vcmp.eq.s32.totalorder %v2960_v30, 7  ;;  %vm869_vm7 = vcmp.eq.s32.totalorder %v2965_v31, 7 }
  0x6d   :  { %2455 = vmatpush1.bf16.msk.msra.mxu1 %vm2454_vm11, %v2740_v6  ;;  %vm2392_vm14 = vmpackc.low %vm643_vm6, %vm642_vm8  ;;  %vm532_vm6 = vcmp.eq.s32.totalorder %v2960_v30, 4  ;;  %vm533_vm11 = vcmp.eq.s32.totalorder %v2965_v31, 4 }
  0x6e   :  { %2393 = vmatprep.subr.msk.bf16.mxu0 %vm2392_vm14, %v2740_v6  ;;  %vm2456_vm15 = vmpackc.low %vm867_vm9, %vm866_vm12  ;;  %vm756_vm9 = vcmp.eq.s32.totalorder %v2960_v30, 6  ;;  %vm757_vm14 = vcmp.eq.s32.totalorder %v2965_v31, 6 }
  0x6f   :  { %2457 = vmatprep.subr.msk.bf16.mxu1 %vm2456_vm15, %v2740_v6  ;;  %vm2394_vm5 = vmpackc.low %vm531_vm13, %vm530_vm10  ;;  %vm646_vm13 = vcmp.eq.s32.totalorder %v2992_v34, 5  ;;  %vm647_vm15 = vcmp.eq.s32.totalorder %v2994_v35, 5 }
  0x70   :  { %2395 = vmatpush1.bf16.msk.msra.mxu0 %vm2394_vm5, %v2740_v6  ;;  %vm2458_vm8 = vmpackc.low %vm755_vm1, %vm754_vm0  ;;  %vm870_vm1 = vcmp.eq.s32.totalorder %v2992_v34, 7  ;;  %vm871_vm5 = vcmp.eq.s32.totalorder %v2994_v35, 7 }
  0x71   :  { %2459 = vmatpush1.bf16.msk.msra.mxu1 %vm2458_vm8, %v2740_v6  ;;  %vm2396_vm12 = vmpackc.low %vm645_vm4, %vm644_vm2  ;;  %vm534_vm4 = vcmp.eq.s32.totalorder %v2992_v34, 4  ;;  %vm535_vm8 = vcmp.eq.s32.totalorder %v2994_v35, 4 }
  0x72   :  { %2397 = vmatprep.subr.msk.bf16.mxu0 %vm2396_vm12, %v2740_v6  ;;  %vm2460_vm10 = vmpackc.low %vm869_vm7, %vm868_vm3  ;;  %vm758_vm7 = vcmp.eq.s32.totalorder %v2992_v34, 6  ;;  %vm759_vm12 = vcmp.eq.s32.totalorder %v2994_v35, 6 }
  0x73   :  { %2461 = vmatprep.subr.msk.bf16.mxu1 %vm2460_vm10, %v2740_v6  ;;  %vm2398_vm0 = vmpackc.low %vm533_vm11, %vm532_vm6  ;;  %vm648_vm11 = vcmp.eq.s32.totalorder %v3010_v36, 5  ;;  %vm649_vm10 = vcmp.eq.s32.totalorder %v3012_v37, 5 }
  0x74   :  { %2399 = vmatpush1.bf16.msk.msra.mxu0 %vm2398_vm0, %v2740_v6  ;;  %vm2462_vm2 = vmpackc.low %vm757_vm14, %vm756_vm9  ;;  %vm872_vm14 = vcmp.eq.s32.totalorder %v3010_v36, 7  ;;  %vm873_vm0 = vcmp.eq.s32.totalorder %v3012_v37, 7 }
  0x75   :  { %2463 = vmatpush1.bf16.msk.msra.mxu1 %vm2462_vm2, %v2740_v6  ;;  %vm2400_vm3 = vmpackc.low %vm647_vm15, %vm646_vm13  ;;  %vm536_vm15 = vcmp.eq.s32.totalorder %v3010_v36, 4  ;;  %vm537_vm2 = vcmp.eq.s32.totalorder %v3012_v37, 4 }
  0x76   :  { %2401 = vmatprep.subr.msk.bf16.mxu0 %vm2400_vm3, %v2740_v6  ;;  %vm2464_vm6 = vmpackc.low %vm871_vm5, %vm870_vm1  ;;  %vm760_vm5 = vcmp.eq.s32.totalorder %v3010_v36, 6  ;;  %vm761_vm3 = vcmp.eq.s32.totalorder %v3012_v37, 6 }
  0x77   :  { %2465 = vmatprep.subr.msk.bf16.mxu1 %vm2464_vm6, %v2740_v6  ;;  %vm2402_vm9 = vmpackc.low %vm535_vm8, %vm534_vm4  ;;  %vm650_vm8 = vcmp.eq.s32.totalorder %v3029_v39, 5  ;;  %vm651_vm6 = vcmp.eq.s32.totalorder %v3031_v40, 5 }
  0x78   :  { %2403 = vmatpush1.bf16.msk.msra.mxu0 %vm2402_vm9, %v2740_v6  ;;  %vm2466_vm13 = vmpackc.low %vm759_vm12, %vm758_vm7  ;;  %vm874_vm12 = vcmp.eq.s32.totalorder %v3029_v39, 7  ;;  %vm875_vm9 = vcmp.eq.s32.totalorder %v3031_v40, 7 }
  0x79   :  { %2467 = vmatpush1.bf16.msk.msra.mxu1 %vm2466_vm13, %v2740_v6  ;;  %vm2404_vm1 = vmpackc.low %vm649_vm10, %vm648_vm11  ;;  %vm538_vm10 = vcmp.eq.s32.totalorder %v3029_v39, 4  ;;  %vm539_vm13 = vcmp.eq.s32.totalorder %v3031_v40, 4 }
  0x7a   :  { %2405 = vmatprep.subr.msk.bf16.mxu0 %vm2404_vm1, %v2740_v6  ;;  %vm2468_vm4 = vmpackc.low %vm873_vm0, %vm872_vm14  ;;  %vm762_vm0 = vcmp.eq.s32.totalorder %v3029_v39, 6  ;;  %vm763_vm1 = vcmp.eq.s32.totalorder %v3031_v40, 6 }
  0x7b   :  { %2469 = vmatprep.subr.msk.bf16.mxu1 %vm2468_vm4, %v2740_v6  ;;  %vm2406_vm7 = vmpackc.low %vm537_vm2, %vm536_vm15  ;;  %vm652_vm2 = vcmp.eq.s32.totalorder %v3045_v41, 5  ;;  %vm653_vm4 = vcmp.eq.s32.totalorder %v3047_v42, 5 }
  0x7c   :  { %2407 = vmatpush1.bf16.msk.msra.mxu0 %vm2406_vm7, %v2740_v6  ;;  %vm2470_vm11 = vmpackc.low %vm761_vm3, %vm760_vm5  ;;  %vm876_vm3 = vcmp.eq.s32.totalorder %v3045_v41, 7  ;;  %vm877_vm7 = vcmp.eq.s32.totalorder %v3047_v42, 7 }
  0x7d   :  { %2471 = vmatpush1.bf16.msk.msra.mxu1 %vm2470_vm11, %v2740_v6  ;;  %vm2408_vm14 = vmpackc.low %vm651_vm6, %vm650_vm8  ;;  %vm540_vm6 = vcmp.eq.s32.totalorder %v3045_v41, 4  ;;  %vm541_vm11 = vcmp.eq.s32.totalorder %v3047_v42, 4 }
  0x7e   :  { %2409 = vmatprep.subr.msk.bf16.mxu0 %vm2408_vm14, %v2740_v6  ;;  %vm2472_vm15 = vmpackc.low %vm875_vm9, %vm874_vm12  ;;  %vm764_vm9 = vcmp.eq.s32.totalorder %v3045_v41, 6  ;;  %vm765_vm14 = vcmp.eq.s32.totalorder %v3047_v42, 6 }
  0x7f   :  { %2473 = vmatprep.subr.msk.bf16.mxu1 %vm2472_vm15, %v2740_v6  ;;  %vm2410_vm5 = vmpackc.low %vm539_vm13, %vm538_vm10 }
  0x80   :  { %2411 = vmatpush1.bf16.msk.msra.mxu0 %vm2410_vm5, %v2740_v6  ;;  %vm2474_vm8 = vmpackc.low %vm763_vm1, %vm762_vm0 }
  0x81   :  { %2475 = vmatpush1.bf16.msk.msra.mxu1 %vm2474_vm8, %v2740_v6  ;;  %vm2412_vm12 = vmpackc.low %vm653_vm4, %vm652_vm2 }
  0x82   :  { %2413 = vmatprep.subr.msk.bf16.mxu0 %vm2412_vm12, %v2740_v6  ;;  %vm2476_vm10 = vmpackc.low %vm877_vm7, %vm876_vm3 }
  0x83   :  { %2477 = vmatprep.subr.msk.bf16.mxu1 %vm2476_vm10, %v2740_v6  ;;  %vm2414_vm13 = vmpackc.low %vm541_vm11, %vm540_vm6 }
  0x84   :  { %2415 = vmatpush1.bf16.msk.msra.mxu0 %vm2414_vm13, %v2740_v6  ;;  %vm2478_vm0 = vmpackc.low %vm765_vm14, %vm764_vm9 }
  0x85   :  { %2479 = vmatpush1.bf16.msk.msra.mxu1 %vm2478_vm0, %v2740_v6  ;;  %2547 = vmatprep.subr.bf16.mxu0 %v2652_v44 }
  0x86   :  { %10 = vsyncpa [#allocation3], 0  ;;  %2569 = vmatprep.subr.bf16.mxu1 %v2653_v45  ;;  %v2657_v49 = vld [vmem:[%s3506_s2 + $0xc8] sm:$0xff]   ;;  %v2660_v52 = vld [vmem:[%s3506_s2 + $0x50] sm:$0xff]   ;;  %vm1891_vm3 = vcmask 1041408   ;;  %vm2743_vm7 = vmmov 0  }
  0x87   :  { %1081 = vmatmul.mubr.bf16.vlgmr.msra.gmra.mrb[4].mxu0 %v3076_v43  ;;  %v2658_v50 = vld [vmem:[%s3506_s2 + $0x8] sm:$0xff]   ;;  %v2661_v53 = vld [vmem:[%s3506_s2 + $0xd0] sm:$0xff]   ;;  %v2664_v56 = vld [vmem:[%s3506_s2 + $0x58] sm:$0xff]   ;;  %vm1887_vm11 = vcmask 31744   ;;  %s2745_s7 = smov [#allocation2]   ;;  %vm1945_vm12 = vcmask 257024  }
  0x88   :  { %1122 = vmatmul.mubr.bf16.vlgmr.msra.gmra.mrb[4].mxu1 %v3076_v43  ;;  %2548 = vmatpush3.bf16.msra.mxu0 %v2654_v46  ;;  %v2659_v51 = vld [vmem:[%s3506_s2 + $0x88] sm:$0xff]   ;;  %v2662_v54 = vld [vmem:[%s3506_s2 + $0x10] sm:$0xff]   ;;  %v2665_v57 = vld [vmem:[%s3506_s2 + $0xd8] sm:$0xff]   ;;  %s1955_s8 = sshll.u32 %s2745_s7, 4  ;;  %vm1948_vm9 = vcmask 261124   ;;  %s1956_s8 = int_to_ptr.vmem [resolvable:$true] %s1955_s8 }
  0x89   :  { %2570 = vmatpush3.bf16.msra.mxu1 %v2655_v47  ;;  %2549 = vmatprep.subr.bf16.mxu0 %v2656_v48  ;;  %v2663_v55 = vld [vmem:[%s3506_s2 + $0x90] sm:$0xff]   ;;  %v2666_v58 = vld [vmem:[%s3506_s2 + $0x18] sm:$0xff]   ;;  %v2668_v60 = vld [vmem:[%s3506_s2 + $0x60] sm:$0xff]   ;;  %s2716_s9 = scalar_lea.vmem %s1956_s8, 128  ;;  %p2721_p1 = scmp.lt.s32.totalorder %s1956_s8, %s1956_s8 }
  0x8a   :  { %2571 = vmatprep.subr.bf16.mxu1 %v2657_v49  ;;  %v2667_v59 = vld [vmem:[%s3506_s2 + $0x98] sm:$0xff]   ;;  %v2669_v61 = vld [vmem:[%s3506_s2 + $0xe0] sm:$0xff]   ;;  %v2672_v0 = vld [vmem:[%s3506_s2 + $0x68] sm:$0xff]   ;;  %p2717_p0 = scmp.ne.s32.totalorder %s1956_s8, %s2716_s9  ;;  %p2722_p2 = scmp.lt.s32.totalorder %s2716_s9, %s2716_s9 }
  0x8b   :  { %v2670_v62 = vld [vmem:[%s3506_s2 + $0x20] sm:$0xff]   ;;  %v2673_v1 = vld [vmem:[%s3506_s2 + $0xe8] sm:$0xff]   ;;  %v2676_v4 = vld [vmem:[%s3506_s2 + $0x70] sm:$0xff]  }
  0x8c   :  { %2550 = vmatpush3.bf16.msra.mxu0 %v2658_v50  ;;  %v2671_v63 = vld [vmem:[%s3506_s2 + $0xa0] sm:$0xff]   ;;  %v2674_v2 = vld [vmem:[%s3506_s2 + $0x28] sm:$0xff]   ;;  %v2677_v5 = vld [vmem:[%s3506_s2 + $0xf0] sm:$0xff]   ;;  %p2723_p3 = por %p2722_p2, %p2721_p1 }
  0x8d   :  { %2572 = vmatpush3.bf16.msra.mxu1 %v2659_v51  ;;  %2551 = vmatprep.subr.bf16.mxu0 %v2660_v52  ;;  %v2675_v3 = vld [vmem:[%s3506_s2 + $0xa8] sm:$0xff]   ;;  %v2678_v6 = vld [vmem:[%s3506_s2 + $0x30] sm:$0xff]   ;;  %v2680_v8 = vld [vmem:[%s3506_s2 + $0x78] sm:$0xff]  }
  0x8e   :  { %2573 = vmatprep.subr.bf16.mxu1 %v2661_v53  ;;  %v2679_v7 = vld [vmem:[%s3506_s2 + $0xb0] sm:$0xff]   ;;  %v2681_v9 = vld [vmem:[%s3506_s2 + $0xf8] sm:$0xff]   ;;  %v2684_v12 = vld [vmem:[%s3506_s2 + $0x140] sm:$0xff]   ;;  %p2724_p4 = pnand %p2723_p3, %p2717_p0 }
  0x8f   :  { %v2682_v10 = vld [vmem:[%s3506_s2 + $0x38] sm:$0xff]   ;;  %v2685_v13 = vld [vmem:[%s3506_s2 + $0x1c0] sm:$0xff]   ;;  %v2688_v27 = vld [vmem:[%s3506_s2 + $0x148] sm:$0xff]  }
  0x90   :  { %2552 = vmatpush3.bf16.msra.mxu0 %v2662_v54  ;;  %v2683_v11 = vld [vmem:[%s3506_s2 + $0xb8] sm:$0xff]   ;;  %v2686_v22 = vld [vmem:[%s3506_s2 + $0x100] sm:$0xff]   ;;  %v2689_v29 = vld [vmem:[%s3506_s2 + $0x1c8] sm:$0xff]  }
  0x91   :  { %2574 = vmatpush3.bf16.msra.mxu1 %v2663_v55  ;;  %2553 = vmatprep.subr.bf16.mxu0 %v2664_v56  ;;  %v2687_v26 = vld [vmem:[%s3506_s2 + $0x180] sm:$0xff]   ;;  %v2690_v30 = vld [vmem:[%s3506_s2 + $0x108] sm:$0xff]   ;;  %v2692_v32 = vld [vmem:[%s3506_s2 + $0x150] sm:$0xff]  }
  0x92   :  { %2575 = vmatprep.subr.bf16.mxu1 %v2665_v57  ;;  %v2691_v31 = vld [vmem:[%s3506_s2 + $0x188] sm:$0xff]   ;;  %v2693_v33 = vld [vmem:[%s3506_s2 + $0x1d0] sm:$0xff]   ;;  %v2696_v36 = vld [vmem:[%s3506_s2 + $0x158] sm:$0xff]  }
  0x93   :  { %v2694_v34 = vld [vmem:[%s3506_s2 + $0x110] sm:$0xff]   ;;  %v2697_v37 = vld [vmem:[%s3506_s2 + $0x1d8] sm:$0xff]   ;;  %v2700_v40 = vld [vmem:[%s3506_s2 + $0x160] sm:$0xff]  }
  0x94   :  { %2554 = vmatpush3.bf16.msra.mxu0 %v2666_v58  ;;  %v2695_v35 = vld [vmem:[%s3506_s2 + $0x190] sm:$0xff]   ;;  %v2698_v38 = vld [vmem:[%s3506_s2 + $0x118] sm:$0xff]   ;;  %v2701_v41 = vld [vmem:[%s3506_s2 + $0x1e0] sm:$0xff]  }
  0x95   :  { %2576 = vmatpush3.bf16.msra.mxu1 %v2667_v59  ;;  %2555 = vmatprep.subr.bf16.mxu0 %v2668_v60  ;;  %v2699_v39 = vld [vmem:[%s3506_s2 + $0x198] sm:$0xff]   ;;  %v2702_v42 = vld [vmem:[%s3506_s2 + $0x120] sm:$0xff]   ;;  %v2704_v44 = vld [vmem:[%s3506_s2 + $0x168] sm:$0xff]  }
  0x96   :  { %2577 = vmatprep.subr.bf16.mxu1 %v2669_v61  ;;  %v2703_v43 = vld [vmem:[%s3506_s2 + $0x1a0] sm:$0xff]   ;;  %v2705_v45 = vld [vmem:[%s3506_s2 + $0x1e8] sm:$0xff]   ;;  %v2708_v48 = vld [vmem:[%s3506_s2 + $0x170] sm:$0xff]  }
  0x97   :  { %v2706_v46 = vld [vmem:[%s3506_s2 + $0x128] sm:$0xff]   ;;  %v2709_v49 = vld [vmem:[%s3506_s2 + $0x1f0] sm:$0xff]   ;;  %v2712_v52 = vld [vmem:[%s3506_s2 + $0x178] sm:$0xff]  }
  0x98   :  { %2556 = vmatpush3.bf16.msra.mxu0 %v2670_v62  ;;  %v2707_v47 = vld [vmem:[%s3506_s2 + $0x1a8] sm:$0xff]   ;;  %v2710_v50 = vld [vmem:[%s3506_s2 + $0x130] sm:$0xff]   ;;  %v2713_v53 = vld [vmem:[%s3506_s2 + $0x1f8] sm:$0xff]  }
  0x99   :  { %2578 = vmatpush3.bf16.msra.mxu1 %v2671_v63  ;;  %2557 = vmatprep.subr.bf16.mxu0 %v2672_v0  ;;  %v2711_v51 = vld [vmem:[%s3506_s2 + $0x1b0] sm:$0xff]   ;;  %v2714_v54 = vld [vmem:[%s3506_s2 + $0x138] sm:$0xff]  }
  0x9a   :  { %2579 = vmatprep.subr.bf16.mxu1 %v2673_v1  ;;  %v2715_v55 = vld [vmem:[%s3506_s2 + $0x1b8] sm:$0xff]   ;;  %s2742_s2 = smov 4  }
  0x9c   :  { %2558 = vmatpush3.bf16.msra.mxu0 %v2674_v2 }
  0x9d   :  { %2580 = vmatpush3.bf16.msra.mxu1 %v2675_v3  ;;  %2559 = vmatprep.subr.bf16.mxu0 %v2676_v4 }
  0x9e   :  { %2581 = vmatprep.subr.bf16.mxu1 %v2677_v5 }
  0xa0   :  { %2560 = vmatpush3.bf16.msra.mxu0 %v2678_v6 }
  0xa1   :  { %2582 = vmatpush3.bf16.msra.mxu1 %v2679_v7  ;;  %2561 = vmatprep.subr.bf16.mxu0 %v2680_v8 }
  0xa2   :  { %2583 = vmatprep.subr.bf16.mxu1 %v2681_v9 }
  0xa4   :  { %2562 = vmatpush3.bf16.msra.mxu0 %v2682_v10 }
  0xa5   :  { %2584 = vmatpush3.bf16.msra.mxu1 %v2683_v11  ;;  %2591 = vmatprep.subr.bf16.mxu0 %v2684_v12 }
  0xa6   :  { %2613 = vmatprep.subr.bf16.mxu1 %v2685_v13 }
 0x11a   :  { %v1000_v14 = vpop.f32.mrb[0].mxu0 }
 0x11b   :  { %v1130_v15 = vpack.c.bf16 %v1000_v14, %v1000_v14  ;;  %v1041_v16 = vpop.f32.mrb[0].mxu1  ;;  %v1002_v17 = vpop.f32.mrb[1].mxu0 }
 0x11c   :  { %v1132_v18 = vpack.c.bf16 %v1041_v16, %v1041_v16  ;;  %v1131_v19 = vpack.c.bf16 %v1002_v17, %v1002_v17  ;;  %v1043_v20 = vpop.f32.mrb[1].mxu1  ;;  %v1004_v21 = vpop.f32.mrb[2].mxu0 }
 0x11d   :  { %v1133_v23 = vpack.c.bf16 %v1043_v20, %v1043_v20  ;;  %v1045_v24 = vpop.f32.mrb[2].mxu1  ;;  %v1005_v25 = vpop.f32.mrb[3].mxu0 }
 0x11e   :  { %v1046_v28 = vpop.f32.mrb[3].mxu1  ;;  %1682 = vmatprep.mubr.bf16.mxu0 %v1131_v19 }
 0x11f   :  { %1722 = vmatprep.mubr.bf16.mxu1 %v1133_v23  ;;  %1683 = vmatmul.mubr.bf16.vlgmr.msra.gmra.mrb[8].mxu0 %v1130_v15  ;;  %v2741_v15 = vmov 0.0  }
 0x120   :  { %1723 = vmatmul.mubr.bf16.vlgmr.msra.gmra.mrb[8].mxu1 %v1132_v18  ;;  %2592 = vmatpush3.bf16.msra.mxu0 %v2686_v22 }
 0x121   :  { %2614 = vmatpush3.bf16.msra.mxu1 %v2687_v26  ;;  %2593 = vmatprep.subr.bf16.mxu0 %v2688_v27 }
 0x122   :  { %2615 = vmatprep.subr.bf16.mxu1 %v2689_v29 }
 0x124   :  { %2594 = vmatpush3.bf16.msra.mxu0 %v2690_v30 }
 0x125   :  { %2616 = vmatpush3.bf16.msra.mxu1 %v2691_v31  ;;  %2595 = vmatprep.subr.bf16.mxu0 %v2692_v32 }
 0x126   :  { %2617 = vmatprep.subr.bf16.mxu1 %v2693_v33 }
 0x128   :  { %2596 = vmatpush3.bf16.msra.mxu0 %v2694_v34 }
 0x129   :  { %2618 = vmatpush3.bf16.msra.mxu1 %v2695_v35  ;;  %2597 = vmatprep.subr.bf16.mxu0 %v2696_v36 }
 0x12a   :  { %2619 = vmatprep.subr.bf16.mxu1 %v2697_v37 }
 0x12c   :  { %2598 = vmatpush3.bf16.msra.mxu0 %v2698_v38 }
 0x12d   :  { %2620 = vmatpush3.bf16.msra.mxu1 %v2699_v39  ;;  %2599 = vmatprep.subr.bf16.mxu0 %v2700_v40 }
 0x12e   :  { %2621 = vmatprep.subr.bf16.mxu1 %v2701_v41 }
 0x130   :  { %2600 = vmatpush3.bf16.msra.mxu0 %v2702_v42 }
 0x131   :  { %2622 = vmatpush3.bf16.msra.mxu1 %v2703_v43  ;;  %2601 = vmatprep.subr.bf16.mxu0 %v2704_v44 }
 0x132   :  { %2623 = vmatprep.subr.bf16.mxu1 %v2705_v45 }
 0x134   :  { %2602 = vmatpush3.bf16.msra.mxu0 %v2706_v46 }
 0x135   :  { %2624 = vmatpush3.bf16.msra.mxu1 %v2707_v47  ;;  %2603 = vmatprep.subr.bf16.mxu0 %v2708_v48  ;;  %v1883_v47 = vld [vmem:[%s3507_s3] sm:$0x3]  ;;  %s2744_s3 = smov 100  }
 0x136   :  { %2625 = vmatprep.subr.bf16.mxu1 %v2709_v49  ;;  %v1893_v48 = vsel %vm1891_vm3, %v1883_v47, 0 }
 0x138   :  { %2604 = vmatpush3.bf16.msra.mxu0 %v2710_v50 }
 0x139   :  { %2626 = vmatpush3.bf16.msra.mxu1 %v2711_v51  ;;  %2605 = vmatprep.subr.bf16.mxu0 %v2712_v52 }
 0x13a   :  { %2627 = vmatprep.subr.bf16.mxu1 %v2713_v53 }
 0x13c   :  { %2606 = vmatpush3.bf16.msra.mxu0 %v2714_v54 }
 0x13d   :  { %2628 = vmatpush3.bf16.msra.mxu1 %v2715_v55  ;;  %2637 = vmatprep.subr.bf16.mxu0 %v2741_v15 }
 0x15a   :  { %v1082_v56 = vpop.f32.mrb[4].mxu0 }
 0x15b   :  { %v1123_v57 = vpop.f32.mrb[4].mxu1  ;;  %v1084_v58 = vpop.f32.mrb[5].mxu0  ;;  %v1134_v63 = vpack.c.bf16 %v1082_v56, %v1082_v56 }
 0x15c   :  { %v1136_v59 = vpack.c.bf16 %v1123_v57, %v1123_v57  ;;  %v1135_v60 = vpack.c.bf16 %v1084_v58, %v1084_v58  ;;  %v1125_v61 = vpop.f32.mrb[5].mxu1  ;;  %v1086_v62 = vpop.f32.mrb[6].mxu0  ;;  %v2545_v58 = vld [vmem:[%s3508_s4] ss:$0 sm:$0xff] }
 0x15d   :  { %v1137_v0 = vpack.c.bf16 %v1125_v61, %v1125_v61  ;;  %v1127_v1 = vpop.f32.mrb[6].mxu1  ;;  %v1087_v2 = vpop.f32.mrb[7].mxu0 }
 0x15e   :  { %v1128_v3 = vpop.f32.mrb[7].mxu1  ;;  %1762 = vmatprep.mubr.bf16.mxu0 %v1135_v60 }
 0x15f   :  { %1802 = vmatprep.mubr.bf16.mxu1 %v1137_v0  ;;  %1763 = vmatmul.mubr.bf16.vlgmr.msra.gmra.mrb[12].mxu0 %v1134_v63 }
 0x160   :  { %1803 = vmatmul.mubr.bf16.vlgmr.msra.gmra.mrb[12].mxu1 %v1136_v59  ;;  %2639 = vmatprep.mubr.msk.bf16.mxu0 %vm2743_vm7, %v2741_v15 }
 0x161   :  { %2638 = vmatpush3.bf16.msra.mxu0 %v1893_v48 }
 0x1f2   :  { %v2563_v4 = vpop.f32.mrb[8].mxu0 }
 0x1f3   :  { %v2585_v5 = vpop.f32.mrb[8].mxu1  ;;  %v2564_v6 = vpop.f32.mrb[9].mxu0 }
 0x1f4   :  { %v2565_v7 = vadd.f32 %v2564_v6, %v2563_v4  ;;  %v2586_v8 = vpop.f32.mrb[9].mxu1  ;;  %v2566_v9 = vpop.f32.mrb[10].mxu0 }
 0x1f5   :  { %v2587_v10 = vadd.f32 %v2586_v8, %v2585_v5  ;;  %v2588_v11 = vpop.f32.mrb[10].mxu1  ;;  %v2567_v12 = vpop.f32.mrb[11].mxu0 }
 0x1f6   :  { %v2589_v13 = vpop.f32.mrb[11].mxu1 }
 0x1f7   :  { %v1725_v14 = vadd.f32 %v2587_v10, %v2565_v7 }
 0x232   :  { %v2607_v16 = vpop.f32.mrb[12].mxu0 }
 0x233   :  { %v2629_v17 = vpop.f32.mrb[12].mxu1  ;;  %v2608_v18 = vpop.f32.mrb[13].mxu0 }
 0x234   :  { %v2609_v19 = vadd.f32 %v2608_v18, %v2607_v16  ;;  %v2630_v20 = vpop.f32.mrb[13].mxu1  ;;  %v2610_v21 = vpop.f32.mrb[14].mxu0 }
 0x235   :  { %v2631_v22 = vadd.f32 %v2630_v20, %v2629_v17  ;;  %v2632_v23 = vpop.f32.mrb[14].mxu1  ;;  %v2611_v24 = vpop.f32.mrb[15].mxu0 }
 0x236   :  { %v1765_v25 = vadd.f32 %v2609_v19, %v1725_v14  ;;  %v2633_v26 = vpop.f32.mrb[15].mxu1 }
 0x238   :  { %v1805_v27 = vadd.f32 %v2631_v22, %v1765_v25 }
 0x23a   :  { %1811 = vrot.lane.b32.xlu0 %v1805_v27, %s2742_s2 }
 0x2ac   :  { %v1812_v28 = vpop.permute.xlu0 %1811 }
 0x2ad   :  { %vm1814_vm1 = vcmp.gt.f32.partialorder %v1805_v27, %v1812_v28 }
 0x2ae   :  { %v1816_v29 = vsel %vm1814_vm1, 1.0, %v2741_v15  ;;  %v1815_v30 = vsel %vm1814_vm1, %v1805_v27, %v1812_v28 }
 0x2af   :  { %1824 = vrot.lane.b32.xlu1 %v1816_v29, %s2742_s2  ;;  %1818 = vrot.lane.b32.xlu0 %v1815_v30, %s2742_s2 }
 0x321   :  { %v1825_v31 = vpop.permute.xlu1 %1824  ;;  %v1819_v32 = vpop.permute.xlu0 %1818 }
 0x322   :  { %vm1821_vm15 = vcmp.gt.f32.partialorder %v1805_v27, %v1819_v32 }
 0x323   :  { %v1827_v33 = vsel %vm1821_vm15, 2.0, %v1825_v31  ;;  %v1822_v34 = vsel %vm1821_vm15, %v1805_v27, %v1819_v32 }
 0x324   :  { %1835 = vrot.lane.b32.xlu0 %v1827_v33, %s2742_s2  ;;  %1829 = vrot.lane.b32.xlu1 %v1822_v34, %s2742_s2 }
 0x396   :  { %v1836_v35 = vpop.permute.xlu0 %1835  ;;  %v1830_v36 = vpop.permute.xlu1 %1829 }
 0x397   :  { %vm1832_vm2 = vcmp.gt.f32.partialorder %v1805_v27, %v1830_v36 }
 0x398   :  { %v1838_v37 = vsel %vm1832_vm2, 3.0, %v1836_v35  ;;  %v1833_v38 = vsel %vm1832_vm2, %v1805_v27, %v1830_v36 }
 0x399   :  { %1846 = vrot.lane.b32.xlu0 %v1838_v37, %s2742_s2  ;;  %1840 = vrot.lane.b32.xlu1 %v1833_v38, %s2742_s2 }
 0x40b   :  { %v1847_v39 = vpop.permute.xlu0 %1846  ;;  %v1841_v40 = vpop.permute.xlu1 %1840 }
 0x40c   :  { %vm1843_vm4 = vcmp.gt.f32.partialorder %v1805_v27, %v1841_v40 }
 0x40d   :  { %v1849_v41 = vsel %vm1843_vm4, 4.0, %v1847_v39  ;;  %v1844_v42 = vsel %vm1843_vm4, %v1805_v27, %v1841_v40 }
 0x40e   :  { %1857 = vrot.lane.b32.xlu0 %v1849_v41, %s2742_s2  ;;  %1851 = vrot.lane.b32.xlu1 %v1844_v42, %s2742_s2 }
 0x480   :  { %v1858_v43 = vpop.permute.xlu0 %1857  ;;  %v1852_v44 = vpop.permute.xlu1 %1851 }
 0x481   :  { %vm1854_vm5 = vcmp.gt.f32.partialorder %v1805_v27, %v1852_v44 }
 0x482   :  { %v1860_v45 = vsel %vm1854_vm5, 5.0, %v1858_v43  ;;  %v1855_v46 = vsel %vm1854_vm5, %v1805_v27, %v1852_v44 }
 0x483   :  { %1868 = vrot.lane.b32.xlu0 %v1860_v45, %s2742_s2  ;;  %1862 = vrot.lane.b32.xlu1 %v1855_v46, %s2742_s2 }
 0x4f5   :  { %v1869_v49 = vpop.permute.xlu0 %1868  ;;  %v1863_v50 = vpop.permute.xlu1 %1862 }
 0x4f6   :  { %vm1865_vm8 = vcmp.gt.f32.partialorder %v1805_v27, %v1863_v50 }
 0x4f7   :  { %v1871_v51 = vsel %vm1865_vm8, 6.0, %v1869_v49  ;;  %v1866_v52 = vsel %vm1865_vm8, %v1805_v27, %v1863_v50 }
 0x4f8   :  { %1878 = vrot.lane.b32.xlu0 %v1871_v51, %s2742_s2  ;;  %1873 = vrot.lane.b32.xlu1 %v1866_v52, %s2742_s2 }
 0x56a   :  { %v1879_v53 = vpop.permute.xlu0 %1878  ;;  %v1874_v54 = vpop.permute.xlu1 %1873 }
 0x56b   :  { %vm1876_vm6 = vcmp.gt.f32.partialorder %v1805_v27, %v1874_v54 }
 0x56c   :  { %v1881_v55 = vsel %vm1876_vm6, 7.0, %v1879_v53 }
 0x56d   :  { %v1882_v56 = vpack.c.bf16 %v1881_v55, %v1881_v55 }
 0x56f   :  { %1885 = vrot.lane.b32.xlu1 %v1882_v56, %s2744_s3 }
 0x5e1   :  { %v1886_v57 = vpop.permute.xlu1 %1885 }
 0x5e2   :  { %2640 = vmatmul.mubr.msk.bf16.vlgmr.msra.gmra.mrb[16].mxu0 %vm1887_vm11, %v1886_v57 }
 0x6b5   :  { %v1929_v59 = vpop.f32.mrb[16].mxu0 }
 0x6b6   :  { %vm1942_vm14 = vcmp.eq.f32.partialorder %v2545_v58, %v1929_v59  ;;  %v2641_v60 = vpop.f32.mrb[17].mxu0 }
 0x6b7   :  { %v2546_v61 = vsel %vm1942_vm14, 1.0, %v2741_v15  ;;  %v1932_v62 = vpop.f32.mrb[18].mxu0 }
 0x6b8   :  { %1946 = vst.msk [vmem:[#allocation2] sm:$0xf] %vm1945_vm12, %v2546_v61  ;;  %v2642_v63 = vpop.f32.mrb[19].mxu0 }
 0x6b9   :  { %1949 = vst.msk [vmem:[#allocation2] sm:$0xf0] %vm1948_vm9, %v2546_v61 }
 0x6ba   :  { %2727 = shalt.err (!%p2724_p4)
}
 0x6bb   :  { %s2728_s10 = scalar_lea.hbm %s3509_s5, 128 }
 0x6bc   :  { %p2729_p5 = scmp.ne.s32.totalorder %s3509_s5, %s2728_s10  ;;  %p2732_p6 = scmp.lt.u32.totalorder %s2728_s10, %s3509_s5 }
 0x6be   :  { %p2734_p7 = pnand %p2732_p6, %p2729_p5 }
 0x6c0   :  { %2737 = shalt.err (!%p2734_p7)
}
 0x6c1   :  { %s2746_s15 = smov 64  }
 0x6c2   :  { %1961 = dma.vmem_to_hbm [thread:$0]  %s1956_s8, 128, %s3509_s5, [#allocation3], %s2746_s15, %s2746_s15, %s2742_s2  }
 0x6c3   :  { %2738 = dma.done.wait [#allocation3], 128  }
 0x6c4   :  { %2739 = vsyncadd [#allocation3], 4294967168 }
 0x6c5   :  { %1965 = vsyncpa [#allocation3], 1 }

</bundles_post_ra>
